<compile_context>
chip_gen: v5e
topology: v5e:2x2
jax: 0.10.0
libtpu: 0.0.40
codegen_flags: <defaults>
</compile_context>

<pallas_src>
import math
import functools

import jax
import jax.numpy as jnp
from jax.experimental import pallas as pl
from jax.experimental.pallas import tpu as pltpu


# ----------------------------------------------------------------------------
# Pallas kernel: one full TransformerLayer for a (bt, S, D) batch tile.
# ----------------------------------------------------------------------------
def _transformer_layer_kernel(*refs, n_heads, apply_pos, mask_val, k_is_q, v_is_q):
    i = 0
    q_ref = refs[i]; i += 1
    if k_is_q:
        k_ref = q_ref
    else:
        k_ref = refs[i]; i += 1
    if v_is_q:
        v_ref = q_ref
    else:
        v_ref = refs[i]; i += 1
    (wq_ref, bq_ref, wk_ref, bk_ref, wv_ref, bv_ref,
     wo_ref, bo_ref, ln1g_ref, ln1b_ref) = refs[i:i + 10]
    i += 10
    if apply_pos:
        (w1_ref, b1_ref, w2_ref, b2_ref, ln2g_ref, ln2b_ref) = refs[i:i + 6]
        i += 6
    out_ref = refs[i]

    bt, S, D = q_ref.shape
    H = n_heads
    dk = D // H
    R = bt * S
    G = H * bt
    scale = 1.0 / math.sqrt(dk)
    bf16 = jnp.bfloat16

    # Flatten the batch tile to (R, D) rows for all dense matmuls.
    q2d = q_ref[...].reshape(R, D)                       # f32 (residual path)
    qb = q2d.astype(bf16)
    kb = qb if k_is_q else k_ref[...].reshape(R, D).astype(bf16)
    vb = qb if v_is_q else v_ref[...].reshape(R, D).astype(bf16)

    # Head-major Q/K/V projections: (H, R, D) x (H, D, dk) -> (H, R, dk).
    dn_proj = (((2,), (1,)), ((0,), (0,)))
    qx = jnp.broadcast_to(qb[None], (H, R, D))
    kx = qx if k_is_q else jnp.broadcast_to(kb[None], (H, R, D))
    vx = qx if v_is_q else jnp.broadcast_to(vb[None], (H, R, D))
    qh = (jax.lax.dot_general(qx, wq_ref[...], dn_proj,
                              preferred_element_type=jnp.float32)
          + bq_ref[...]).astype(bf16)
    kh = (jax.lax.dot_general(kx, wk_ref[...], dn_proj,
                              preferred_element_type=jnp.float32)
          + bk_ref[...]).astype(bf16)
    vh = (jax.lax.dot_general(vx, wv_ref[...], dn_proj,
                              preferred_element_type=jnp.float32)
          + bv_ref[...]).astype(bf16)

    # In-kernel mask: allowed iff (col - row) < mask_val
    # (== `triu(ones, k=mask_val) == 0` in the reference).
    rows = jax.lax.broadcasted_iota(jnp.int32, (S, S), 0)
    cols = jax.lax.broadcasted_iota(jnp.int32, (S, S), 1)
    allowed = ((cols - rows) < mask_val)[None, :, :]     # (1, S, S), bcast over G

    # Attention: one batched contraction over G = H * bt (no Python loop).
    # (H, bt*S, dk) -> (H*bt, S, dk) only regroups leading/sublane dims.
    qg = qh.reshape(G, S, dk)
    kg = kh.reshape(G, S, dk)
    vg = vh.reshape(G, S, dk)
    dn_scores = (((2,), (2,)), ((0,), (0,)))  # (G,S,dk) x (G,S,dk) -> (G,S,S)
    dn_pv = (((2,), (1,)), ((0,), (0,)))      # (G,S,S)  x (G,S,dk) -> (G,S,dk)
    s = jax.lax.dot_general(qg, kg, dn_scores,
                            preferred_element_type=jnp.float32) * scale
    s = jnp.where(allowed, s, jnp.float32(-1e32))
    s = s - jnp.max(s, axis=-1, keepdims=True)
    e = jnp.exp(s)
    inv = pl.reciprocal(jnp.sum(e, axis=-1, keepdims=True), approx=True)
    prob = jnp.where(allowed, e * inv, jnp.float32(0.0))
    og = jax.lax.dot_general(prob.astype(bf16), vg, dn_pv,
                             preferred_element_type=jnp.float32)  # (G,S,dk)
    o_heads = og.reshape(H, R, dk)

    # Output projection: sum over heads of (H, R, dk) x (H, dk, D), plus bias.
    dn_out = (((2,), (1,)), ((0,), (0,)))
    attn = jax.lax.dot_general(o_heads.astype(bf16), wo_ref[...], dn_out,
                               preferred_element_type=jnp.float32)
    attn = jnp.sum(attn, axis=0) + bo_ref[0]             # (R, D)

    # Residual + LayerNorm 1 (f32).
    x = q2d + attn
    mu = jnp.mean(x, axis=-1, keepdims=True)
    var = jnp.mean(jnp.square(x - mu), axis=-1, keepdims=True)
    x = (x - mu) * jax.lax.rsqrt(var + 1e-5) * ln1g_ref[0] + ln1b_ref[0]

    if apply_pos:
        h = jnp.dot(x.astype(bf16), w1_ref[...],
                    preferred_element_type=jnp.float32) + b1_ref[0]
        h = jnp.maximum(h, 0.0)
        h = jnp.dot(h.astype(bf16), w2_ref[...],
                    preferred_element_type=jnp.float32) + b2_ref[0]
        y = x + h
        mu = jnp.mean(y, axis=-1, keepdims=True)
        var = jnp.mean(jnp.square(y - mu), axis=-1, keepdims=True)
        x = (y - mu) * jax.lax.rsqrt(var + 1e-5) * ln2g_ref[0] + ln2b_ref[0]

    out_ref[...] = x.reshape(bt, S, D)


# ----------------------------------------------------------------------------
# Wrapper: one TransformerLayer via pallas_call (grid over batch tiles).
# ----------------------------------------------------------------------------
def _choose_batch_tile(batch, seq):
    """Rows per grid step: grow bt*S toward ~512 MXU rows while keeping >=2
    grid steps when possible (dual TensorCore on v7x)."""
    best = 1
    for cand in range(1, batch + 1):
        if batch % cand != 0 or cand * seq > 512:
            continue
        if batch // cand >= 2 or batch == 1:
            best = cand
    return best


def transformer_layer(query, key, values, p, *, mask_val, apply_pos, n_heads):
    B, S, D = query.shape
    dk = D // n_heads
    bf16 = jnp.bfloat16

    k_is_q = key is query
    v_is_q = values is query

    bt = _choose_batch_tile(B, S)
    grid = (B // bt,)

    # Head-major weight/bias layouts, built once outside the kernel (plain XLA).
    def w_heads(w):                                      # (D, D) -> (H, D, dk)
        return jnp.transpose(w.reshape(D, n_heads, dk), (1, 0, 2)).astype(bf16)

    def b_heads(b):                                      # (1, D) -> (H, 1, dk)
        return jnp.transpose(b.reshape(1, n_heads, dk), (1, 0, 2))

    weights = [
        w_heads(p["wq"]), b_heads(p["bq"]),
        w_heads(p["wk"]), b_heads(p["bk"]),
        w_heads(p["wv"]), b_heads(p["bv"]),
        p["wo"].reshape(n_heads, dk, D).astype(bf16), p["bo"],
        p["ln1_g"], p["ln1_b"],
    ]
    if apply_pos:
        weights += [p["w1"].astype(bf16), p["b1"],
                    p["w2"].astype(bf16), p["b2"],
                    p["ln2_g"], p["ln2_b"]]

    act_spec = pl.BlockSpec((bt, S, D), lambda i: (i, 0, 0))

    def const_spec(arr):
        zeros = (0,) * arr.ndim
        return pl.BlockSpec(arr.shape, lambda i: zeros)

    inputs = [query]
    in_specs = [act_spec]
    if not k_is_q:
        inputs.append(key)
        in_specs.append(act_spec)
    if not v_is_q:
        inputs.append(values)
        in_specs.append(act_spec)
    inputs += weights
    in_specs += [const_spec(w) for w in weights]

    kernel = functools.partial(
        _transformer_layer_kernel, n_heads=n_heads, apply_pos=apply_pos,
        mask_val=mask_val, k_is_q=k_is_q, v_is_q=v_is_q)

    return pl.pallas_call(
        kernel,
        out_shape=jax.ShapeDtypeStruct((B, S, D), jnp.float32),
        grid=grid,
        in_specs=in_specs,
        out_specs=pl.BlockSpec((bt, S, D), lambda i: (i, 0, 0)),
        compiler_params=pltpu.CompilerParams(
            dimension_semantics=("parallel",),
            vmem_limit_bytes=48 * 1024 * 1024),
    )(*inputs)


# ----------------------------------------------------------------------------
# Architecture forward (CFGKT): n_blocks encoders on y, 2*n_blocks on x.
# ----------------------------------------------------------------------------
def architecture_forward(q_embed, qa_embed, params, *, n_blocks, n_heads):
    # TODO(synk): the full layer stack could be fused into a single pallas_call
    # (weights double-buffered from HBM) to avoid per-layer HBM round-trips of
    # the activations; kept per-layer for clarity/robustness.
    y = qa_embed
    x = q_embed
    for i in range(n_blocks):
        y = transformer_layer(y, y, y, params["blocks_1"][i],
                              mask_val=1, apply_pos=True, n_heads=n_heads)
    flag_first = True
    for i in range(2 * n_blocks):
        if flag_first:
            x = transformer_layer(x, x, x, params["blocks_2"][i],
                                  mask_val=1, apply_pos=False, n_heads=n_heads)
            flag_first = False
        else:
            x = transformer_layer(x, x, y, params["blocks_2"][i],
                                  mask_val=0, apply_pos=True, n_heads=n_heads)
            flag_first = True
    return x


# ----------------------------------------------------------------------------
# Deterministic parameter init (synthetic; shapes follow the PyTorch module).
# Linear weights stored pre-transposed as (in_features, out_features).
# ----------------------------------------------------------------------------
def _xavier(key, shape):
    fan_in, fan_out = shape
    lim = math.sqrt(6.0 / (fan_in + fan_out))
    return jax.random.uniform(key, shape, jnp.float32, -lim, lim)


def init_layer_params(key, d_model, d_ff, kq_same):
    ks = jax.random.split(key, 8)
    wk = _xavier(ks[0], (d_model, d_model))
    wv = _xavier(ks[1], (d_model, d_model))
    wo = _xavier(ks[2], (d_model, d_model))
    wq = wk if kq_same else _xavier(ks[3], (d_model, d_model))  # kq_same -> q uses k_linear
    w1 = _xavier(ks[4], (d_model, d_ff))
    w2 = _xavier(ks[5], (d_ff, d_model))
    b1 = jax.random.uniform(ks[6], (1, d_ff), jnp.float32, -0.05, 0.05)
    b2 = jax.random.uniform(ks[7], (1, d_model), jnp.float32, -0.05, 0.05)
    zd = jnp.zeros((1, d_model), jnp.float32)
    return dict(
        wq=wq, bq=zd, wk=wk, bk=zd, wv=wv, bv=zd, wo=wo, bo=zd,
        ln1_g=jnp.ones((1, d_model), jnp.float32), ln1_b=zd,
        w1=w1, b1=b1, w2=w2, b2=b2,
        ln2_g=jnp.ones((1, d_model), jnp.float32), ln2_b=zd,
    )


def init_architecture(key, n_blocks, d_model, d_ff, kq_same):
    keys = jax.random.split(key, 3 * n_blocks)
    return {
        "blocks_1": [init_layer_params(keys[i], d_model, d_ff, kq_same)
                     for i in range(n_blocks)],
        "blocks_2": [init_layer_params(keys[n_blocks + i], d_model, d_ff, kq_same)
                     for i in range(2 * n_blocks)],
    }


# ----------------------------------------------------------------------------
# Pure-JAX reference mirroring the kernel numerics (bf16 matmul inputs with
# f32 accumulation, f32 softmax / LayerNorm) for a meaningful tolerance check.
# ----------------------------------------------------------------------------
def _ref_layer(query, key, values, p, mask_val, apply_pos, n_heads):
    B, S, D = query.shape
    dk = D // n_heads
    scale = 1.0 / math.sqrt(dk)
    bf = jnp.bfloat16

    def mm(a, b):
        return jax.lax.dot_general(
            a.astype(bf), b.astype(bf),
            (((a.ndim - 1,), (0,)), ((), ())),
            preferred_element_type=jnp.float32)

    qp = mm(query, p["wq"]) + p["bq"][0]
    kp = mm(key, p["wk"]) + p["bk"][0]
    vp = mm(values, p["wv"]) + p["bv"][0]

    def split(x):
        return x.reshape(B, S, n_heads, dk).transpose(0, 2, 1, 3)

    qh, kh, vh = split(qp), split(kp), split(vp)
    s = jnp.einsum("bhqd,bhkd->bhqk", qh.astype(bf), kh.astype(bf),
                   preferred_element_type=jnp.float32) * scale
    idx = jnp.arange(S)
    allowed = (idx[None, :] - idx[:, None]) < mask_val
    s = jnp.where(allowed, s, -1e32)
    s = s - s.max(-1, keepdims=True)
    e = jnp.exp(s)
    prob = jnp.where(allowed, e / e.sum(-1, keepdims=True), 0.0)
    o = jnp.einsum("bhqk,bhkd->bhqd", prob.astype(bf), vh.astype(bf),
                   preferred_element_type=jnp.float32)
    concat = o.transpose(0, 2, 1, 3).reshape(B, S, D)
    attn = mm(concat, p["wo"]) + p["bo"][0]

    def ln(x, g, b):
        mu = x.mean(-1, keepdims=True)
        var = jnp.square(x - mu).mean(-1, keepdims=True)
        return (x - mu) * jax.lax.rsqrt(var + 1e-5) * g[0] + b[0]

    x = ln(query + attn, p["ln1_g"], p["ln1_b"])
    if apply_pos:
        f = jnp.maximum(mm(x, p["w1"]) + p["b1"][0], 0.0)
        f = mm(f, p["w2"]) + p["b2"][0]
        x = ln(x + f, p["ln2_g"], p["ln2_b"])
    return x


def _ref_forward(q_embed, qa_embed, params, n_blocks, n_heads):
    y, x = qa_embed, q_embed
    for i in range(n_blocks):
        y = _ref_layer(y, y, y, params["blocks_1"][i], 1, True, n_heads)
    flag_first = True
    for i in range(2 * n_blocks):
        if flag_first:
            x = _ref_layer(x, x, x, params["blocks_2"][i], 1, False, n_heads)
            flag_first = False
        else:
            x = _ref_layer(x, x, y, params["blocks_2"][i], 0, True, n_heads)
            flag_first = True
    return x


if __name__ == "__main__":
    B, S, D = 2, 8, 32
    n_heads, d_ff, n_blocks = 2, 64, 1
    kq_same = True  # kq_same == 1 in the PyTorch module

    root = jax.random.PRNGKey(0)
    k_q, k_qa, k_params = jax.random.split(root, 3)
    q_embed = jax.random.normal(k_q, (B, S, D), jnp.float32)
    qa_embed = jax.random.normal(k_qa, (B, S, D), jnp.float32)
    params = init_architecture(k_params, n_blocks, D, d_ff, kq_same)

    fwd = jax.jit(functools.partial(architecture_forward,
                                    n_blocks=n_blocks, n_heads=n_heads))
    out = jax.block_until_ready(fwd(q_embed, qa_embed, params))

    ref = jax.block_until_ready(_ref_forward(q_embed, qa_embed, params,
                                             n_blocks, n_heads))
    assert out.shape == (B, S, D)
    assert bool(jnp.all(jnp.isfinite(out)))
    # Tolerance covers the approximate softmax reciprocal (EUP vrcp) and
    # bf16-input MXU accumulation-order differences vs. the XLA reference.
    err = float(jnp.max(jnp.abs(out - ref)))
    assert err < 2e-2, f"max abs diff {err}"

    print("KERNEL_OK")
</pallas_src>

<mosaic_0001>
module attributes {stable_mosaic.version = 11 : i64} {
  func.func @_transformer_layer_kernel(%arg0: i32, %arg1: memref<1x8x32xf32, #tpu.memory_space<vmem>>, %arg2: memref<2x32x16xbf16, #tpu.memory_space<vmem>>, %arg3: memref<2x1x16xf32, #tpu.memory_space<vmem>>, %arg4: memref<2x32x16xbf16, #tpu.memory_space<vmem>>, %arg5: memref<2x1x16xf32, #tpu.memory_space<vmem>>, %arg6: memref<2x32x16xbf16, #tpu.memory_space<vmem>>, %arg7: memref<2x1x16xf32, #tpu.memory_space<vmem>>, %arg8: memref<2x16x32xbf16, #tpu.memory_space<vmem>>, %arg9: memref<1x32xf32, #tpu.memory_space<vmem>>, %arg10: memref<1x32xf32, #tpu.memory_space<vmem>>, %arg11: memref<1x32xf32, #tpu.memory_space<vmem>>, %arg12: memref<1x8x32xf32, #tpu.memory_space<vmem>>) attributes {dimension_semantics = [#tpu.dimension_semantics<parallel>], iteration_bounds = array<i64: 2>, scalar_prefetch = 0 : i64, scratch_operands = 0 : i64, tpu.core_type = #tpu.core_type<tc>, window_params = [{transform_indices = @transform_0, window_bounds = array<i64: 1, 8, 32>}, {pipeline_mode = #tpu.pipeline_mode<synchronous>, transform_indices = @transform_1, window_bounds = array<i64: 2, 32, 16>}, {pipeline_mode = #tpu.pipeline_mode<synchronous>, transform_indices = @transform_2, window_bounds = array<i64: 2, 1, 16>}, {pipeline_mode = #tpu.pipeline_mode<synchronous>, transform_indices = @transform_3, window_bounds = array<i64: 2, 32, 16>}, {pipeline_mode = #tpu.pipeline_mode<synchronous>, transform_indices = @transform_4, window_bounds = array<i64: 2, 1, 16>}, {pipeline_mode = #tpu.pipeline_mode<synchronous>, transform_indices = @transform_5, window_bounds = array<i64: 2, 32, 16>}, {pipeline_mode = #tpu.pipeline_mode<synchronous>, transform_indices = @transform_6, window_bounds = array<i64: 2, 1, 16>}, {pipeline_mode = #tpu.pipeline_mode<synchronous>, transform_indices = @transform_7, window_bounds = array<i64: 2, 16, 32>}, {pipeline_mode = #tpu.pipeline_mode<synchronous>, transform_indices = @transform_8, window_bounds = array<i64: 1, 32>}, {pipeline_mode = #tpu.pipeline_mode<synchronous>, transform_indices = @transform_9, window_bounds = array<i64: 1, 32>}, {pipeline_mode = #tpu.pipeline_mode<synchronous>, transform_indices = @transform_10, window_bounds = array<i64: 1, 32>}, {transform_indices = @transform_11, window_bounds = array<i64: 1, 8, 32>}]} {
    %c0 = arith.constant 0 : index
    %c0_0 = arith.constant 0 : index
    %c0_1 = arith.constant 0 : index
    %0 = vector.load %arg1[%c0, %c0_0, %c0_1] : memref<1x8x32xf32, #tpu.memory_space<vmem>>, vector<1x8x32xf32>
    %1 = vector.shape_cast %0 : vector<1x8x32xf32> to vector<8x32xf32>
    %2 = arith.truncf %1 : vector<8x32xf32> to vector<8x32xbf16>
    %3 = vector.shape_cast %2 : vector<8x32xbf16> to vector<1x8x32xbf16>
    %4 = vector.shape_cast %3 : vector<1x8x32xbf16> to vector<1x8x32xbf16>
    %5 = vector.broadcast %4 : vector<1x8x32xbf16> to vector<2x8x32xbf16>
    %c0_2 = arith.constant 0 : index
    %c0_3 = arith.constant 0 : index
    %c0_4 = arith.constant 0 : index
    %6 = vector.load %arg2[%c0_2, %c0_3, %c0_4] : memref<2x32x16xbf16, #tpu.memory_space<vmem>>, vector<2x32x16xbf16>
    %cst = arith.constant dense<0.000000e+00> : vector<2x8x16xf32>
    %7 = tpu.matmul %5, %6, %cst {dimension_numbers = #tpu.dot_dimension_numbers<[2], [1], [1], [2], [0, 0, 0, 1, 1, 2], [0], [0]>} : vector<2x8x32xbf16>, vector<2x32x16xbf16>, vector<2x8x16xf32> -> vector<2x8x16xf32>
    %c0_5 = arith.constant 0 : index
    %c0_6 = arith.constant 0 : index
    %c0_7 = arith.constant 0 : index
    %8 = vector.load %arg3[%c0_5, %c0_6, %c0_7] : memref<2x1x16xf32, #tpu.memory_space<vmem>>, vector<2x1x16xf32>
    %9 = vector.broadcast %8 : vector<2x1x16xf32> to vector<2x8x16xf32>
    %10 = arith.addf %7, %9 : vector<2x8x16xf32>
    %11 = arith.truncf %10 : vector<2x8x16xf32> to vector<2x8x16xbf16>
    %c0_8 = arith.constant 0 : index
    %c0_9 = arith.constant 0 : index
    %c0_10 = arith.constant 0 : index
    %12 = vector.load %arg4[%c0_8, %c0_9, %c0_10] : memref<2x32x16xbf16, #tpu.memory_space<vmem>>, vector<2x32x16xbf16>
    %cst_11 = arith.constant dense<0.000000e+00> : vector<2x8x16xf32>
    %13 = tpu.matmul %5, %12, %cst_11 {dimension_numbers = #tpu.dot_dimension_numbers<[2], [1], [1], [2], [0, 0, 0, 1, 1, 2], [0], [0]>} : vector<2x8x32xbf16>, vector<2x32x16xbf16>, vector<2x8x16xf32> -> vector<2x8x16xf32>
    %c0_12 = arith.constant 0 : index
    %c0_13 = arith.constant 0 : index
    %c0_14 = arith.constant 0 : index
    %14 = vector.load %arg5[%c0_12, %c0_13, %c0_14] : memref<2x1x16xf32, #tpu.memory_space<vmem>>, vector<2x1x16xf32>
    %15 = vector.broadcast %14 : vector<2x1x16xf32> to vector<2x8x16xf32>
    %16 = arith.addf %13, %15 : vector<2x8x16xf32>
    %17 = arith.truncf %16 : vector<2x8x16xf32> to vector<2x8x16xbf16>
    %c0_15 = arith.constant 0 : index
    %c0_16 = arith.constant 0 : index
    %c0_17 = arith.constant 0 : index
    %18 = vector.load %arg6[%c0_15, %c0_16, %c0_17] : memref<2x32x16xbf16, #tpu.memory_space<vmem>>, vector<2x32x16xbf16>
    %cst_18 = arith.constant dense<0.000000e+00> : vector<2x8x16xf32>
    %19 = tpu.matmul %5, %18, %cst_18 {dimension_numbers = #tpu.dot_dimension_numbers<[2], [1], [1], [2], [0, 0, 0, 1, 1, 2], [0], [0]>} : vector<2x8x32xbf16>, vector<2x32x16xbf16>, vector<2x8x16xf32> -> vector<2x8x16xf32>
    %c0_19 = arith.constant 0 : index
    %c0_20 = arith.constant 0 : index
    %c0_21 = arith.constant 0 : index
    %20 = vector.load %arg7[%c0_19, %c0_20, %c0_21] : memref<2x1x16xf32, #tpu.memory_space<vmem>>, vector<2x1x16xf32>
    %21 = vector.broadcast %20 : vector<2x1x16xf32> to vector<2x8x16xf32>
    %22 = arith.addf %19, %21 : vector<2x8x16xf32>
    %23 = arith.truncf %22 : vector<2x8x16xf32> to vector<2x8x16xbf16>
    %24 = tpu.iota {dimensions = array<i32: 0>} : vector<8x8xi32>
    %25 = tpu.iota {dimensions = array<i32: 1>} : vector<8x8xi32>
    %26 = arith.subi %25, %24 : vector<8x8xi32>
    %c1_i32 = arith.constant 1 : i32
    %27 = vector.broadcast %c1_i32 : i32 to vector<8x8xi32>
    %28 = arith.cmpi slt, %26, %27 : vector<8x8xi32>
    %29 = vector.shape_cast %28 : vector<8x8xi1> to vector<1x8x8xi1>
    %cst_22 = arith.constant dense<0.000000e+00> : vector<2x8x8xf32>
    %30 = tpu.matmul %11, %17, %cst_22 {dimension_numbers = #tpu.dot_dimension_numbers<[2], [2], [1], [1], [0, 0, 0, 1, 1, 1], [0], [0]>} : vector<2x8x16xbf16>, vector<2x8x16xbf16>, vector<2x8x8xf32> -> vector<2x8x8xf32>
    %cst_23 = arith.constant 2.500000e-01 : f32
    %31 = vector.broadcast %cst_23 : f32 to vector<2x8x8xf32>
    %32 = arith.mulf %30, %31 : vector<2x8x8xf32>
    %cst_24 = arith.constant -1.000000e+32 : f32
    %33 = vector.shape_cast %29 : vector<1x8x8xi1> to vector<1x8x8xi1>
    %34 = vector.broadcast %33 : vector<1x8x8xi1> to vector<2x8x8xi1>
    %35 = vector.broadcast %cst_24 : f32 to vector<2x8x8xf32>
    %36 = arith.select %34, %32, %35 : vector<2x8x8xi1>, vector<2x8x8xf32>
    %cst_25 = arith.constant dense<0xFF800000> : vector<2x8xf32>
    %37 = vector.multi_reduction <maximumf>, %36, %cst_25 [2] : vector<2x8x8xf32> to vector<2x8xf32>
    %38 = vector.shape_cast %37 : vector<2x8xf32> to vector<2x8x1xf32>
    %39 = vector.broadcast %38 : vector<2x8x1xf32> to vector<2x8x8xf32>
    %40 = arith.subf %36, %39 : vector<2x8x8xf32>
    %41 = math.exp %40 : vector<2x8x8xf32>
    %cst_26 = arith.constant dense<0.000000e+00> : vector<2x8xf32>
    %42 = vector.multi_reduction <add>, %41, %cst_26 [2] : vector<2x8x8xf32> to vector<2x8xf32>
    %43 = vector.shape_cast %42 : vector<2x8xf32> to vector<2x8x1xf32>
    %44 = tpu.reciprocal %43 {approx = true} : vector<2x8x1xf32> -> vector<2x8x1xf32>
    %45 = vector.broadcast %44 : vector<2x8x1xf32> to vector<2x8x8xf32>
    %46 = arith.mulf %41, %45 : vector<2x8x8xf32>
    %cst_27 = arith.constant 0.000000e+00 : f32
    %47 = vector.shape_cast %29 : vector<1x8x8xi1> to vector<1x8x8xi1>
    %48 = vector.broadcast %47 : vector<1x8x8xi1> to vector<2x8x8xi1>
    %49 = vector.broadcast %cst_27 : f32 to vector<2x8x8xf32>
    %50 = arith.select %48, %46, %49 : vector<2x8x8xi1>, vector<2x8x8xf32>
    %51 = arith.truncf %50 : vector<2x8x8xf32> to vector<2x8x8xbf16>
    %cst_28 = arith.constant dense<0.000000e+00> : vector<2x8x16xf32>
    %52 = tpu.matmul %51, %23, %cst_28 {dimension_numbers = #tpu.dot_dimension_numbers<[2], [1], [1], [2], [0, 0, 0, 1, 1, 2], [0], [0]>} : vector<2x8x8xbf16>, vector<2x8x16xbf16>, vector<2x8x16xf32> -> vector<2x8x16xf32>
    %53 = arith.truncf %52 : vector<2x8x16xf32> to vector<2x8x16xbf16>
    %c0_29 = arith.constant 0 : index
    %c0_30 = arith.constant 0 : index
    %c0_31 = arith.constant 0 : index
    %54 = vector.load %arg8[%c0_29, %c0_30, %c0_31] : memref<2x16x32xbf16, #tpu.memory_space<vmem>>, vector<2x16x32xbf16>
    %cst_32 = arith.constant dense<0.000000e+00> : vector<2x8x32xf32>
    %55 = tpu.matmul %53, %54, %cst_32 {dimension_numbers = #tpu.dot_dimension_numbers<[2], [1], [1], [2], [0, 0, 0, 1, 1, 2], [0], [0]>} : vector<2x8x16xbf16>, vector<2x16x32xbf16>, vector<2x8x32xf32> -> vector<2x8x32xf32>
    %cst_33 = arith.constant dense<0.000000e+00> : vector<8x32xf32>
    %56 = vector.multi_reduction <add>, %55, %cst_33 [0] : vector<2x8x32xf32> to vector<8x32xf32>
    %c0_34 = arith.constant 0 : index
    %c0_35 = arith.constant 0 : index
    %57 = vector.load %arg9[%c0_34, %c0_35] : memref<1x32xf32, #tpu.memory_space<vmem>>, vector<1x32xf32>
    %58 = vector.shape_cast %57 : vector<1x32xf32> to vector<32xf32>
    %59 = vector.shape_cast %58 : vector<32xf32> to vector<1x32xf32>
    %60 = vector.broadcast %59 : vector<1x32xf32> to vector<8x32xf32>
    %61 = arith.addf %56, %60 : vector<8x32xf32>
    %62 = arith.addf %1, %61 : vector<8x32xf32>
    %cst_36 = arith.constant dense<0.000000e+00> : vector<8xf32>
    %63 = vector.multi_reduction <add>, %62, %cst_36 [1] : vector<8x32xf32> to vector<8xf32>
    %64 = vector.shape_cast %63 : vector<8xf32> to vector<8x1xf32>
    %cst_37 = arith.constant 3.200000e+01 : f32
    %65 = vector.broadcast %cst_37 : f32 to vector<8x1xf32>
    %66 = arith.divf %64, %65 : vector<8x1xf32>
    %67 = vector.broadcast %66 : vector<8x1xf32> to vector<8x32xf32>
    %68 = arith.subf %62, %67 : vector<8x32xf32>
    %69 = arith.mulf %68, %68 : vector<8x32xf32>
    %cst_38 = arith.constant dense<0.000000e+00> : vector<8xf32>
    %70 = vector.multi_reduction <add>, %69, %cst_38 [1] : vector<8x32xf32> to vector<8xf32>
    %71 = vector.shape_cast %70 : vector<8xf32> to vector<8x1xf32>
    %cst_39 = arith.constant 3.200000e+01 : f32
    %72 = vector.broadcast %cst_39 : f32 to vector<8x1xf32>
    %73 = arith.divf %71, %72 : vector<8x1xf32>
    %74 = vector.broadcast %66 : vector<8x1xf32> to vector<8x32xf32>
    %75 = arith.subf %62, %74 : vector<8x32xf32>
    %cst_40 = arith.constant 9.99999974E-6 : f32
    %76 = vector.broadcast %cst_40 : f32 to vector<8x1xf32>
    %77 = arith.addf %73, %76 : vector<8x1xf32>
    %78 = math.rsqrt %77 : vector<8x1xf32>
    %79 = vector.broadcast %78 : vector<8x1xf32> to vector<8x32xf32>
    %80 = arith.mulf %75, %79 : vector<8x32xf32>
    %c0_41 = arith.constant 0 : index
    %c0_42 = arith.constant 0 : index
    %81 = vector.load %arg10[%c0_41, %c0_42] : memref<1x32xf32, #tpu.memory_space<vmem>>, vector<1x32xf32>
    %82 = vector.shape_cast %81 : vector<1x32xf32> to vector<32xf32>
    %83 = vector.shape_cast %82 : vector<32xf32> to vector<1x32xf32>
    %84 = vector.broadcast %83 : vector<1x32xf32> to vector<8x32xf32>
    %85 = arith.mulf %80, %84 : vector<8x32xf32>
    %c0_43 = arith.constant 0 : index
    %c0_44 = arith.constant 0 : index
    %86 = vector.load %arg11[%c0_43, %c0_44] : memref<1x32xf32, #tpu.memory_space<vmem>>, vector<1x32xf32>
    %87 = vector.shape_cast %86 : vector<1x32xf32> to vector<32xf32>
    %88 = vector.shape_cast %87 : vector<32xf32> to vector<1x32xf32>
    %89 = vector.broadcast %88 : vector<1x32xf32> to vector<8x32xf32>
    %90 = arith.addf %85, %89 : vector<8x32xf32>
    %91 = vector.shape_cast %90 : vector<8x32xf32> to vector<1x8x32xf32>
    %c0_45 = arith.constant 0 : index
    %c0_46 = arith.constant 0 : index
    %c0_47 = arith.constant 0 : index
    %92 = vector.load %arg12[%c0_45, %c0_46, %c0_47] : memref<1x8x32xf32, #tpu.memory_space<vmem>>, vector<1x8x32xf32>
    tpu.vector_store %arg12[%c0_45, %c0_46, %c0_47], %91 {strides = array<i32>} : memref<1x8x32xf32, #tpu.memory_space<vmem>>, vector<1x8x32xf32>,
    return
  }
  func.func @transform_0(%arg0: i32) -> (i32, i32, i32) {
    %c0_i32 = arith.constant 0 : i32
    %c0_i32_0 = arith.constant 0 : i32
    %c0_i32_1 = arith.constant 0 : i32
    return %arg0, %c0_i32, %c0_i32_0 : i32, i32, i32
  }
  func.func @transform_1(%arg0: i32) -> (i32, i32, i32) {
    %c0_i32 = arith.constant 0 : i32
    %c0_i32_0 = arith.constant 0 : i32
    %c0_i32_1 = arith.constant 0 : i32
    %c0_i32_2 = arith.constant 0 : i32
    return %c0_i32, %c0_i32_0, %c0_i32_1 : i32, i32, i32
  }
  func.func @transform_2(%arg0: i32) -> (i32, i32, i32) {
    %c0_i32 = arith.constant 0 : i32
    %c0_i32_0 = arith.constant 0 : i32
    %c0_i32_1 = arith.constant 0 : i32
    %c0_i32_2 = arith.constant 0 : i32
    return %c0_i32, %c0_i32_0, %c0_i32_1 : i32, i32, i32
  }
  func.func @transform_3(%arg0: i32) -> (i32, i32, i32) {
    %c0_i32 = arith.constant 0 : i32
    %c0_i32_0 = arith.constant 0 : i32
    %c0_i32_1 = arith.constant 0 : i32
    %c0_i32_2 = arith.constant 0 : i32
    return %c0_i32, %c0_i32_0, %c0_i32_1 : i32, i32, i32
  }
  func.func @transform_4(%arg0: i32) -> (i32, i32, i32) {
    %c0_i32 = arith.constant 0 : i32
    %c0_i32_0 = arith.constant 0 : i32
    %c0_i32_1 = arith.constant 0 : i32
    %c0_i32_2 = arith.constant 0 : i32
    return %c0_i32, %c0_i32_0, %c0_i32_1 : i32, i32, i32
  }
  func.func @transform_5(%arg0: i32) -> (i32, i32, i32) {
    %c0_i32 = arith.constant 0 : i32
    %c0_i32_0 = arith.constant 0 : i32
    %c0_i32_1 = arith.constant 0 : i32
    %c0_i32_2 = arith.constant 0 : i32
    return %c0_i32, %c0_i32_0, %c0_i32_1 : i32, i32, i32
  }
  func.func @transform_6(%arg0: i32) -> (i32, i32, i32) {
    %c0_i32 = arith.constant 0 : i32
    %c0_i32_0 = arith.constant 0 : i32
    %c0_i32_1 = arith.constant 0 : i32
    %c0_i32_2 = arith.constant 0 : i32
    return %c0_i32, %c0_i32_0, %c0_i32_1 : i32, i32, i32
  }
  func.func @transform_7(%arg0: i32) -> (i32, i32, i32) {
    %c0_i32 = arith.constant 0 : i32
    %c0_i32_0 = arith.constant 0 : i32
    %c0_i32_1 = arith.constant 0 : i32
    %c0_i32_2 = arith.constant 0 : i32
    return %c0_i32, %c0_i32_0, %c0_i32_1 : i32, i32, i32
  }
  func.func @transform_8(%arg0: i32) -> (i32, i32) {
    %c0_i32 = arith.constant 0 : i32
    %c0_i32_0 = arith.constant 0 : i32
    %c0_i32_1 = arith.constant 0 : i32
    return %c0_i32, %c0_i32_0 : i32, i32
  }
  func.func @transform_9(%arg0: i32) -> (i32, i32) {
    %c0_i32 = arith.constant 0 : i32
    %c0_i32_0 = arith.constant 0 : i32
    %c0_i32_1 = arith.constant 0 : i32
    return %c0_i32, %c0_i32_0 : i32, i32
  }
  func.func @transform_10(%arg0: i32) -> (i32, i32) {
    %c0_i32 = arith.constant 0 : i32
    %c0_i32_0 = arith.constant 0 : i32
    %c0_i32_1 = arith.constant 0 : i32
    return %c0_i32, %c0_i32_0 : i32, i32
  }
  func.func @transform_11(%arg0: i32) -> (i32, i32, i32) {
    %c0_i32 = arith.constant 0 : i32
    %c0_i32_0 = arith.constant 0 : i32
    %c0_i32_1 = arith.constant 0 : i32
    return %arg0, %c0_i32, %c0_i32_0 : i32, i32, i32
  }
}

module attributes {stable_mosaic.version = 11 : i64} {
  func.func @_transformer_layer_kernel(%arg0: i32, %arg1: memref<1x8x32xf32, #tpu.memory_space<vmem>>, %arg2: memref<1x8x32xf32, #tpu.memory_space<vmem>>, %arg3: memref<2x32x16xbf16, #tpu.memory_space<vmem>>, %arg4: memref<2x1x16xf32, #tpu.memory_space<vmem>>, %arg5: memref<2x32x16xbf16, #tpu.memory_space<vmem>>, %arg6: memref<2x1x16xf32, #tpu.memory_space<vmem>>, %arg7: memref<2x32x16xbf16, #tpu.memory_space<vmem>>, %arg8: memref<2x1x16xf32, #tpu.memory_space<vmem>>, %arg9: memref<2x16x32xbf16, #tpu.memory_space<vmem>>, %arg10: memref<1x32xf32, #tpu.memory_space<vmem>>, %arg11: memref<1x32xf32, #tpu.memory_space<vmem>>, %arg12: memref<1x32xf32, #tpu.memory_space<vmem>>, %arg13: memref<32x64xbf16, #tpu.memory_space<vmem>>, %arg14: memref<1x64xf32, #tpu.memory_space<vmem>>, %arg15: memref<64x32xbf16, #tpu.memory_space<vmem>>, %arg16: memref<1x32xf32, #tpu.memory_space<vmem>>, %arg17: memref<1x32xf32, #tpu.memory_space<vmem>>, %arg18: memref<1x32xf32, #tpu.memory_space<vmem>>, %arg19: memref<1x8x32xf32, #tpu.memory_space<vmem>>) attributes {dimension_semantics = [#tpu.dimension_semantics<parallel>], iteration_bounds = array<i64: 2>, scalar_prefetch = 0 : i64, scratch_operands = 0 : i64, tpu.core_type = #tpu.core_type<tc>, window_params = [{transform_indices = @transform_0, window_bounds = array<i64: 1, 8, 32>}, {transform_indices = @transform_1, window_bounds = array<i64: 1, 8, 32>}, {pipeline_mode = #tpu.pipeline_mode<synchronous>, transform_indices = @transform_2, window_bounds = array<i64: 2, 32, 16>}, {pipeline_mode = #tpu.pipeline_mode<synchronous>, transform_indices = @transform_3, window_bounds = array<i64: 2, 1, 16>}, {pipeline_mode = #tpu.pipeline_mode<synchronous>, transform_indices = @transform_4, window_bounds = array<i64: 2, 32, 16>}, {pipeline_mode = #tpu.pipeline_mode<synchronous>, transform_indices = @transform_5, window_bounds = array<i64: 2, 1, 16>}, {pipeline_mode = #tpu.pipeline_mode<synchronous>, transform_indices = @transform_6, window_bounds = array<i64: 2, 32, 16>}, {pipeline_mode = #tpu.pipeline_mode<synchronous>, transform_indices = @transform_7, window_bounds = array<i64: 2, 1, 16>}, {pipeline_mode = #tpu.pipeline_mode<synchronous>, transform_indices = @transform_8, window_bounds = array<i64: 2, 16, 32>}, {pipeline_mode = #tpu.pipeline_mode<synchronous>, transform_indices = @transform_9, window_bounds = array<i64: 1, 32>}, {pipeline_mode = #tpu.pipeline_mode<synchronous>, transform_indices = @transform_10, window_bounds = array<i64: 1, 32>}, {pipeline_mode = #tpu.pipeline_mode<synchronous>, transform_indices = @transform_11, window_bounds = array<i64: 1, 32>}, {pipeline_mode = #tpu.pipeline_mode<synchronous>, transform_indices = @transform_12, window_bounds = array<i64: 32, 64>}, {pipeline_mode = #tpu.pipeline_mode<synchronous>, transform_indices = @transform_13, window_bounds = array<i64: 1, 64>}, {pipeline_mode = #tpu.pipeline_mode<synchronous>, transform_indices = @transform_14, window_bounds = array<i64: 64, 32>}, {pipeline_mode = #tpu.pipeline_mode<synchronous>, transform_indices = @transform_15, window_bounds = array<i64: 1, 32>}, {pipeline_mode = #tpu.pipeline_mode<synchronous>, transform_indices = @transform_16, window_bounds = array<i64: 1, 32>}, {pipeline_mode = #tpu.pipeline_mode<synchronous>, transform_indices = @transform_17, window_bounds = array<i64: 1, 32>}, {transform_indices = @transform_18, window_bounds = array<i64: 1, 8, 32>}]} {
    %c0 = arith.constant 0 : index
    %c0_0 = arith.constant 0 : index
    %c0_1 = arith.constant 0 : index
    %0 = vector.load %arg1[%c0, %c0_0, %c0_1] : memref<1x8x32xf32, #tpu.memory_space<vmem>>, vector<1x8x32xf32>
    %1 = vector.shape_cast %0 : vector<1x8x32xf32> to vector<8x32xf32>
    %2 = arith.truncf %1 : vector<8x32xf32> to vector<8x32xbf16>
    %c0_2 = arith.constant 0 : index
    %c0_3 = arith.constant 0 : index
    %c0_4 = arith.constant 0 : index
    %3 = vector.load %arg2[%c0_2, %c0_3, %c0_4] : memref<1x8x32xf32, #tpu.memory_space<vmem>>, vector<1x8x32xf32>
    %4 = vector.shape_cast %3 : vector<1x8x32xf32> to vector<8x32xf32>
    %5 = arith.truncf %4 : vector<8x32xf32> to vector<8x32xbf16>
    %6 = vector.shape_cast %2 : vector<8x32xbf16> to vector<1x8x32xbf16>
    %7 = vector.shape_cast %6 : vector<1x8x32xbf16> to vector<1x8x32xbf16>
    %8 = vector.broadcast %7 : vector<1x8x32xbf16> to vector<2x8x32xbf16>
    %9 = vector.shape_cast %5 : vector<8x32xbf16> to vector<1x8x32xbf16>
    %10 = vector.shape_cast %9 : vector<1x8x32xbf16> to vector<1x8x32xbf16>
    %11 = vector.broadcast %10 : vector<1x8x32xbf16> to vector<2x8x32xbf16>
    %c0_5 = arith.constant 0 : index
    %c0_6 = arith.constant 0 : index
    %c0_7 = arith.constant 0 : index
    %12 = vector.load %arg3[%c0_5, %c0_6, %c0_7] : memref<2x32x16xbf16, #tpu.memory_space<vmem>>, vector<2x32x16xbf16>
    %cst = arith.constant dense<0.000000e+00> : vector<2x8x16xf32>
    %13 = tpu.matmul %8, %12, %cst {dimension_numbers = #tpu.dot_dimension_numbers<[2], [1], [1], [2], [0, 0, 0, 1, 1, 2], [0], [0]>} : vector<2x8x32xbf16>, vector<2x32x16xbf16>, vector<2x8x16xf32> -> vector<2x8x16xf32>
    %c0_8 = arith.constant 0 : index
    %c0_9 = arith.constant 0 : index
    %c0_10 = arith.constant 0 : index
    %14 = vector.load %arg4[%c0_8, %c0_9, %c0_10] : memref<2x1x16xf32, #tpu.memory_space<vmem>>, vector<2x1x16xf32>
    %15 = vector.broadcast %14 : vector<2x1x16xf32> to vector<2x8x16xf32>
    %16 = arith.addf %13, %15 : vector<2x8x16xf32>
    %17 = arith.truncf %16 : vector<2x8x16xf32> to vector<2x8x16xbf16>
    %c0_11 = arith.constant 0 : index
    %c0_12 = arith.constant 0 : index
    %c0_13 = arith.constant 0 : index
    %18 = vector.load %arg5[%c0_11, %c0_12, %c0_13] : memref<2x32x16xbf16, #tpu.memory_space<vmem>>, vector<2x32x16xbf16>
    %cst_14 = arith.constant dense<0.000000e+00> : vector<2x8x16xf32>
    %19 = tpu.matmul %8, %18, %cst_14 {dimension_numbers = #tpu.dot_dimension_numbers<[2], [1], [1], [2], [0, 0, 0, 1, 1, 2], [0], [0]>} : vector<2x8x32xbf16>, vector<2x32x16xbf16>, vector<2x8x16xf32> -> vector<2x8x16xf32>
    %c0_15 = arith.constant 0 : index
    %c0_16 = arith.constant 0 : index
    %c0_17 = arith.constant 0 : index
    %20 = vector.load %arg6[%c0_15, %c0_16, %c0_17] : memref<2x1x16xf32, #tpu.memory_space<vmem>>, vector<2x1x16xf32>
    %21 = vector.broadcast %20 : vector<2x1x16xf32> to vector<2x8x16xf32>
    %22 = arith.addf %19, %21 : vector<2x8x16xf32>
    %23 = arith.truncf %22 : vector<2x8x16xf32> to vector<2x8x16xbf16>
    %c0_18 = arith.constant 0 : index
    %c0_19 = arith.constant 0 : index
    %c0_20 = arith.constant 0 : index
    %24 = vector.load %arg7[%c0_18, %c0_19, %c0_20] : memref<2x32x16xbf16, #tpu.memory_space<vmem>>, vector<2x32x16xbf16>
    %cst_21 = arith.constant dense<0.000000e+00> : vector<2x8x16xf32>
    %25 = tpu.matmul %11, %24, %cst_21 {dimension_numbers = #tpu.dot_dimension_numbers<[2], [1], [1], [2], [0, 0, 0, 1, 1, 2], [0], [0]>} : vector<2x8x32xbf16>, vector<2x32x16xbf16>, vector<2x8x16xf32> -> vector<2x8x16xf32>
    %c0_22 = arith.constant 0 : index
    %c0_23 = arith.constant 0 : index
    %c0_24 = arith.constant 0 : index
    %26 = vector.load %arg8[%c0_22, %c0_23, %c0_24] : memref<2x1x16xf32, #tpu.memory_space<vmem>>, vector<2x1x16xf32>
    %27 = vector.broadcast %26 : vector<2x1x16xf32> to vector<2x8x16xf32>
    %28 = arith.addf %25, %27 : vector<2x8x16xf32>
    %29 = arith.truncf %28 : vector<2x8x16xf32> to vector<2x8x16xbf16>
    %30 = tpu.iota {dimensions = array<i32: 0>} : vector<8x8xi32>
    %31 = tpu.iota {dimensions = array<i32: 1>} : vector<8x8xi32>
    %32 = arith.subi %31, %30 : vector<8x8xi32>
    %c0_i32 = arith.constant 0 : i32
    %33 = vector.broadcast %c0_i32 : i32 to vector<8x8xi32>
    %34 = arith.cmpi slt, %32, %33 : vector<8x8xi32>
    %35 = vector.shape_cast %34 : vector<8x8xi1> to vector<1x8x8xi1>
    %cst_25 = arith.constant dense<0.000000e+00> : vector<2x8x8xf32>
    %36 = tpu.matmul %17, %23, %cst_25 {dimension_numbers = #tpu.dot_dimension_numbers<[2], [2], [1], [1], [0, 0, 0, 1, 1, 1], [0], [0]>} : vector<2x8x16xbf16>, vector<2x8x16xbf16>, vector<2x8x8xf32> -> vector<2x8x8xf32>
    %cst_26 = arith.constant 2.500000e-01 : f32
    %37 = vector.broadcast %cst_26 : f32 to vector<2x8x8xf32>
    %38 = arith.mulf %36, %37 : vector<2x8x8xf32>
    %cst_27 = arith.constant -1.000000e+32 : f32
    %39 = vector.shape_cast %35 : vector<1x8x8xi1> to vector<1x8x8xi1>
    %40 = vector.broadcast %39 : vector<1x8x8xi1> to vector<2x8x8xi1>
    %41 = vector.broadcast %cst_27 : f32 to vector<2x8x8xf32>
    %42 = arith.select %40, %38, %41 : vector<2x8x8xi1>, vector<2x8x8xf32>
    %cst_28 = arith.constant dense<0xFF800000> : vector<2x8xf32>
    %43 = vector.multi_reduction <maximumf>, %42, %cst_28 [2] : vector<2x8x8xf32> to vector<2x8xf32>
    %44 = vector.shape_cast %43 : vector<2x8xf32> to vector<2x8x1xf32>
    %45 = vector.broadcast %44 : vector<2x8x1xf32> to vector<2x8x8xf32>
    %46 = arith.subf %42, %45 : vector<2x8x8xf32>
    %47 = math.exp %46 : vector<2x8x8xf32>
    %cst_29 = arith.constant dense<0.000000e+00> : vector<2x8xf32>
    %48 = vector.multi_reduction <add>, %47, %cst_29 [2] : vector<2x8x8xf32> to vector<2x8xf32>
    %49 = vector.shape_cast %48 : vector<2x8xf32> to vector<2x8x1xf32>
    %50 = tpu.reciprocal %49 {approx = true} : vector<2x8x1xf32> -> vector<2x8x1xf32>
    %51 = vector.broadcast %50 : vector<2x8x1xf32> to vector<2x8x8xf32>
    %52 = arith.mulf %47, %51 : vector<2x8x8xf32>
    %cst_30 = arith.constant 0.000000e+00 : f32
    %53 = vector.shape_cast %35 : vector<1x8x8xi1> to vector<1x8x8xi1>
    %54 = vector.broadcast %53 : vector<1x8x8xi1> to vector<2x8x8xi1>
    %55 = vector.broadcast %cst_30 : f32 to vector<2x8x8xf32>
    %56 = arith.select %54, %52, %55 : vector<2x8x8xi1>, vector<2x8x8xf32>
    %57 = arith.truncf %56 : vector<2x8x8xf32> to vector<2x8x8xbf16>
    %cst_31 = arith.constant dense<0.000000e+00> : vector<2x8x16xf32>
    %58 = tpu.matmul %57, %29, %cst_31 {dimension_numbers = #tpu.dot_dimension_numbers<[2], [1], [1], [2], [0, 0, 0, 1, 1, 2], [0], [0]>} : vector<2x8x8xbf16>, vector<2x8x16xbf16>, vector<2x8x16xf32> -> vector<2x8x16xf32>
    %59 = arith.truncf %58 : vector<2x8x16xf32> to vector<2x8x16xbf16>
    %c0_32 = arith.constant 0 : index
    %c0_33 = arith.constant 0 : index
    %c0_34 = arith.constant 0 : index
    %60 = vector.load %arg9[%c0_32, %c0_33, %c0_34] : memref<2x16x32xbf16, #tpu.memory_space<vmem>>, vector<2x16x32xbf16>
    %cst_35 = arith.constant dense<0.000000e+00> : vector<2x8x32xf32>
    %61 = tpu.matmul %59, %60, %cst_35 {dimension_numbers = #tpu.dot_dimension_numbers<[2], [1], [1], [2], [0, 0, 0, 1, 1, 2], [0], [0]>} : vector<2x8x16xbf16>, vector<2x16x32xbf16>, vector<2x8x32xf32> -> vector<2x8x32xf32>
    %cst_36 = arith.constant dense<0.000000e+00> : vector<8x32xf32>
    %62 = vector.multi_reduction <add>, %61, %cst_36 [0] : vector<2x8x32xf32> to vector<8x32xf32>
    %c0_37 = arith.constant 0 : index
    %c0_38 = arith.constant 0 : index
    %63 = vector.load %arg10[%c0_37, %c0_38] : memref<1x32xf32, #tpu.memory_space<vmem>>, vector<1x32xf32>
    %64 = vector.shape_cast %63 : vector<1x32xf32> to vector<32xf32>
    %65 = vector.shape_cast %64 : vector<32xf32> to vector<1x32xf32>
    %66 = vector.broadcast %65 : vector<1x32xf32> to vector<8x32xf32>
    %67 = arith.addf %62, %66 : vector<8x32xf32>
    %68 = arith.addf %1, %67 : vector<8x32xf32>
    %cst_39 = arith.constant dense<0.000000e+00> : vector<8xf32>
    %69 = vector.multi_reduction <add>, %68, %cst_39 [1] : vector<8x32xf32> to vector<8xf32>
    %70 = vector.shape_cast %69 : vector<8xf32> to vector<8x1xf32>
    %cst_40 = arith.constant 3.200000e+01 : f32
    %71 = vector.broadcast %cst_40 : f32 to vector<8x1xf32>
    %72 = arith.divf %70, %71 : vector<8x1xf32>
    %73 = vector.broadcast %72 : vector<8x1xf32> to vector<8x32xf32>
    %74 = arith.subf %68, %73 : vector<8x32xf32>
    %75 = arith.mulf %74, %74 : vector<8x32xf32>
    %cst_41 = arith.constant dense<0.000000e+00> : vector<8xf32>
    %76 = vector.multi_reduction <add>, %75, %cst_41 [1] : vector<8x32xf32> to vector<8xf32>
    %77 = vector.shape_cast %76 : vector<8xf32> to vector<8x1xf32>
    %cst_42 = arith.constant 3.200000e+01 : f32
    %78 = vector.broadcast %cst_42 : f32 to vector<8x1xf32>
    %79 = arith.divf %77, %78 : vector<8x1xf32>
    %80 = vector.broadcast %72 : vector<8x1xf32> to vector<8x32xf32>
    %81 = arith.subf %68, %80 : vector<8x32xf32>
    %cst_43 = arith.constant 9.99999974E-6 : f32
    %82 = vector.broadcast %cst_43 : f32 to vector<8x1xf32>
    %83 = arith.addf %79, %82 : vector<8x1xf32>
    %84 = math.rsqrt %83 : vector<8x1xf32>
    %85 = vector.broadcast %84 : vector<8x1xf32> to vector<8x32xf32>
    %86 = arith.mulf %81, %85 : vector<8x32xf32>
    %c0_44 = arith.constant 0 : index
    %c0_45 = arith.constant 0 : index
    %87 = vector.load %arg11[%c0_44, %c0_45] : memref<1x32xf32, #tpu.memory_space<vmem>>, vector<1x32xf32>
    %88 = vector.shape_cast %87 : vector<1x32xf32> to vector<32xf32>
    %89 = vector.shape_cast %88 : vector<32xf32> to vector<1x32xf32>
    %90 = vector.broadcast %89 : vector<1x32xf32> to vector<8x32xf32>
    %91 = arith.mulf %86, %90 : vector<8x32xf32>
    %c0_46 = arith.constant 0 : index
    %c0_47 = arith.constant 0 : index
    %92 = vector.load %arg12[%c0_46, %c0_47] : memref<1x32xf32, #tpu.memory_space<vmem>>, vector<1x32xf32>
    %93 = vector.shape_cast %92 : vector<1x32xf32> to vector<32xf32>
    %94 = vector.shape_cast %93 : vector<32xf32> to vector<1x32xf32>
    %95 = vector.broadcast %94 : vector<1x32xf32> to vector<8x32xf32>
    %96 = arith.addf %91, %95 : vector<8x32xf32>
    %97 = arith.truncf %96 : vector<8x32xf32> to vector<8x32xbf16>
    %c0_48 = arith.constant 0 : index
    %c0_49 = arith.constant 0 : index
    %98 = vector.load %arg13[%c0_48, %c0_49] : memref<32x64xbf16, #tpu.memory_space<vmem>>, vector<32x64xbf16>
    %cst_50 = arith.constant dense<0.000000e+00> : vector<8x64xf32>
    %99 = tpu.matmul %97, %98, %cst_50 {dimension_numbers = #tpu.dot_dimension_numbers<[1], [0], [0], [1], [0, 0, 1, 1], [], []>} : vector<8x32xbf16>, vector<32x64xbf16>, vector<8x64xf32> -> vector<8x64xf32>
    %c0_51 = arith.constant 0 : index
    %c0_52 = arith.constant 0 : index
    %100 = vector.load %arg14[%c0_51, %c0_52] : memref<1x64xf32, #tpu.memory_space<vmem>>, vector<1x64xf32>
    %101 = vector.shape_cast %100 : vector<1x64xf32> to vector<64xf32>
    %102 = vector.shape_cast %101 : vector<64xf32> to vector<1x64xf32>
    %103 = vector.broadcast %102 : vector<1x64xf32> to vector<8x64xf32>
    %104 = arith.addf %99, %103 : vector<8x64xf32>
    %cst_53 = arith.constant 0.000000e+00 : f32
    %105 = vector.broadcast %cst_53 : f32 to vector<8x64xf32>
    %106 = arith.maximumf %104, %105 : vector<8x64xf32>
    %107 = arith.truncf %106 : vector<8x64xf32> to vector<8x64xbf16>
    %c0_54 = arith.constant 0 : index
    %c0_55 = arith.constant 0 : index
    %108 = vector.load %arg15[%c0_54, %c0_55] : memref<64x32xbf16, #tpu.memory_space<vmem>>, vector<64x32xbf16>
    %cst_56 = arith.constant dense<0.000000e+00> : vector<8x32xf32>
    %109 = tpu.matmul %107, %108, %cst_56 {dimension_numbers = #tpu.dot_dimension_numbers<[1], [0], [0], [1], [0, 0, 1, 1], [], []>} : vector<8x64xbf16>, vector<64x32xbf16>, vector<8x32xf32> -> vector<8x32xf32>
    %c0_57 = arith.constant 0 : index
    %c0_58 = arith.constant 0 : index
    %110 = vector.load %arg16[%c0_57, %c0_58] : memref<1x32xf32, #tpu.memory_space<vmem>>, vector<1x32xf32>
    %111 = vector.shape_cast %110 : vector<1x32xf32> to vector<32xf32>
    %112 = vector.shape_cast %111 : vector<32xf32> to vector<1x32xf32>
    %113 = vector.broadcast %112 : vector<1x32xf32> to vector<8x32xf32>
    %114 = arith.addf %109, %113 : vector<8x32xf32>
    %115 = arith.addf %96, %114 : vector<8x32xf32>
    %cst_59 = arith.constant dense<0.000000e+00> : vector<8xf32>
    %116 = vector.multi_reduction <add>, %115, %cst_59 [1] : vector<8x32xf32> to vector<8xf32>
    %117 = vector.shape_cast %116 : vector<8xf32> to vector<8x1xf32>
    %cst_60 = arith.constant 3.200000e+01 : f32
    %118 = vector.broadcast %cst_60 : f32 to vector<8x1xf32>
    %119 = arith.divf %117, %118 : vector<8x1xf32>
    %120 = vector.broadcast %119 : vector<8x1xf32> to vector<8x32xf32>
    %121 = arith.subf %115, %120 : vector<8x32xf32>
    %122 = arith.mulf %121, %121 : vector<8x32xf32>
    %cst_61 = arith.constant dense<0.000000e+00> : vector<8xf32>
    %123 = vector.multi_reduction <add>, %122, %cst_61 [1] : vector<8x32xf32> to vector<8xf32>
    %124 = vector.shape_cast %123 : vector<8xf32> to vector<8x1xf32>
    %cst_62 = arith.constant 3.200000e+01 : f32
    %125 = vector.broadcast %cst_62 : f32 to vector<8x1xf32>
    %126 = arith.divf %124, %125 : vector<8x1xf32>
    %127 = vector.broadcast %119 : vector<8x1xf32> to vector<8x32xf32>
    %128 = arith.subf %115, %127 : vector<8x32xf32>
    %cst_63 = arith.constant 9.99999974E-6 : f32
    %129 = vector.broadcast %cst_63 : f32 to vector<8x1xf32>
    %130 = arith.addf %126, %129 : vector<8x1xf32>
    %131 = math.rsqrt %130 : vector<8x1xf32>
    %132 = vector.broadcast %131 : vector<8x1xf32> to vector<8x32xf32>
    %133 = arith.mulf %128, %132 : vector<8x32xf32>
    %c0_64 = arith.constant 0 : index
    %c0_65 = arith.constant 0 : index
    %134 = vector.load %arg17[%c0_64, %c0_65] : memref<1x32xf32, #tpu.memory_space<vmem>>, vector<1x32xf32>
    %135 = vector.shape_cast %134 : vector<1x32xf32> to vector<32xf32>
    %136 = vector.shape_cast %135 : vector<32xf32> to vector<1x32xf32>
    %137 = vector.broadcast %136 : vector<1x32xf32> to vector<8x32xf32>
    %138 = arith.mulf %133, %137 : vector<8x32xf32>
    %c0_66 = arith.constant 0 : index
    %c0_67 = arith.constant 0 : index
    %139 = vector.load %arg18[%c0_66, %c0_67] : memref<1x32xf32, #tpu.memory_space<vmem>>, vector<1x32xf32>
    %140 = vector.shape_cast %139 : vector<1x32xf32> to vector<32xf32>
    %141 = vector.shape_cast %140 : vector<32xf32> to vector<1x32xf32>
    %142 = vector.broadcast %141 : vector<1x32xf32> to vector<8x32xf32>
    %143 = arith.addf %138, %142 : vector<8x32xf32>
    %144 = vector.shape_cast %143 : vector<8x32xf32> to vector<1x8x32xf32>
    %c0_68 = arith.constant 0 : index
    %c0_69 = arith.constant 0 : index
    %c0_70 = arith.constant 0 : index
    %145 = vector.load %arg19[%c0_68, %c0_69, %c0_70] : memref<1x8x32xf32, #tpu.memory_space<vmem>>, vector<1x8x32xf32>
    tpu.vector_store %arg19[%c0_68, %c0_69, %c0_70], %144 {strides = array<i32>} : memref<1x8x32xf32, #tpu.memory_space<vmem>>, vector<1x8x32xf32>,
    return
  }
  func.func @transform_0(%arg0: i32) -> (i32, i32, i32) {
    %c0_i32 = arith.constant 0 : i32
    %c0_i32_0 = arith.constant 0 : i32
    %c0_i32_1 = arith.constant 0 : i32
    return %arg0, %c0_i32, %c0_i32_0 : i32, i32, i32
  }
  func.func @transform_1(%arg0: i32) -> (i32, i32, i32) {
    %c0_i32 = arith.constant 0 : i32
    %c0_i32_0 = arith.constant 0 : i32
    %c0_i32_1 = arith.constant 0 : i32
    return %arg0, %c0_i32, %c0_i32_0 : i32, i32, i32
  }
  func.func @transform_2(%arg0: i32) -> (i32, i32, i32) {
    %c0_i32 = arith.constant 0 : i32
    %c0_i32_0 = arith.constant 0 : i32
    %c0_i32_1 = arith.constant 0 : i32
    %c0_i32_2 = arith.constant 0 : i32
    return %c0_i32, %c0_i32_0, %c0_i32_1 : i32, i32, i32
  }
  func.func @transform_3(%arg0: i32) -> (i32, i32, i32) {
    %c0_i32 = arith.constant 0 : i32
    %c0_i32_0 = arith.constant 0 : i32
    %c0_i32_1 = arith.constant 0 : i32
    %c0_i32_2 = arith.constant 0 : i32
    return %c0_i32, %c0_i32_0, %c0_i32_1 : i32, i32, i32
  }
  func.func @transform_4(%arg0: i32) -> (i32, i32, i32) {
    %c0_i32 = arith.constant 0 : i32
    %c0_i32_0 = arith.constant 0 : i32
    %c0_i32_1 = arith.constant 0 : i32
    %c0_i32_2 = arith.constant 0 : i32
    return %c0_i32, %c0_i32_0, %c0_i32_1 : i32, i32, i32
  }
  func.func @transform_5(%arg0: i32) -> (i32, i32, i32) {
    %c0_i32 = arith.constant 0 : i32
    %c0_i32_0 = arith.constant 0 : i32
    %c0_i32_1 = arith.constant 0 : i32
    %c0_i32_2 = arith.constant 0 : i32
    return %c0_i32, %c0_i32_0, %c0_i32_1 : i32, i32, i32
  }
  func.func @transform_6(%arg0: i32) -> (i32, i32, i32) {
    %c0_i32 = arith.constant 0 : i32
    %c0_i32_0 = arith.constant 0 : i32
    %c0_i32_1 = arith.constant 0 : i32
    %c0_i32_2 = arith.constant 0 : i32
    return %c0_i32, %c0_i32_0, %c0_i32_1 : i32, i32, i32
  }
  func.func @transform_7(%arg0: i32) -> (i32, i32, i32) {
    %c0_i32 = arith.constant 0 : i32
    %c0_i32_0 = arith.constant 0 : i32
    %c0_i32_1 = arith.constant 0 : i32
    %c0_i32_2 = arith.constant 0 : i32
    return %c0_i32, %c0_i32_0, %c0_i32_1 : i32, i32, i32
  }
  func.func @transform_8(%arg0: i32) -> (i32, i32, i32) {
    %c0_i32 = arith.constant 0 : i32
    %c0_i32_0 = arith.constant 0 : i32
    %c0_i32_1 = arith.constant 0 : i32
    %c0_i32_2 = arith.constant 0 : i32
    return %c0_i32, %c0_i32_0, %c0_i32_1 : i32, i32, i32
  }
  func.func @transform_9(%arg0: i32) -> (i32, i32) {
    %c0_i32 = arith.constant 0 : i32
    %c0_i32_0 = arith.constant 0 : i32
    %c0_i32_1 = arith.constant 0 : i32
    return %c0_i32, %c0_i32_0 : i32, i32
  }
  func.func @transform_10(%arg0: i32) -> (i32, i32) {
    %c0_i32 = arith.constant 0 : i32
    %c0_i32_0 = arith.constant 0 : i32
    %c0_i32_1 = arith.constant 0 : i32
    return %c0_i32, %c0_i32_0 : i32, i32
  }
  func.func @transform_11(%arg0: i32) -> (i32, i32) {
    %c0_i32 = arith.constant 0 : i32
    %c0_i32_0 = arith.constant 0 : i32
    %c0_i32_1 = arith.constant 0 : i32
    return %c0_i32, %c0_i32_0 : i32, i32
  }
  func.func @transform_12(%arg0: i32) -> (i32, i32) {
    %c0_i32 = arith.constant 0 : i32
    %c0_i32_0 = arith.constant 0 : i32
    %c0_i32_1 = arith.constant 0 : i32
    return %c0_i32, %c0_i32_0 : i32, i32
  }
  func.func @transform_13(%arg0: i32) -> (i32, i32) {
    %c0_i32 = arith.constant 0 : i32
    %c0_i32_0 = arith.constant 0 : i32
    %c0_i32_1 = arith.constant 0 : i32
    return %c0_i32, %c0_i32_0 : i32, i32
  }
  func.func @transform_14(%arg0: i32) -> (i32, i32) {
    %c0_i32 = arith.constant 0 : i32
    %c0_i32_0 = arith.constant 0 : i32
    %c0_i32_1 = arith.constant 0 : i32
    return %c0_i32, %c0_i32_0 : i32, i32
  }
  func.func @transform_15(%arg0: i32) -> (i32, i32) {
    %c0_i32 = arith.constant 0 : i32
    %c0_i32_0 = arith.constant 0 : i32
    %c0_i32_1 = arith.constant 0 : i32
    return %c0_i32, %c0_i32_0 : i32, i32
  }
  func.func @transform_16(%arg0: i32) -> (i32, i32) {
    %c0_i32 = arith.constant 0 : i32
    %c0_i32_0 = arith.constant 0 : i32
    %c0_i32_1 = arith.constant 0 : i32
    return %c0_i32, %c0_i32_0 : i32, i32
  }
  func.func @transform_17(%arg0: i32) -> (i32, i32) {
    %c0_i32 = arith.constant 0 : i32
    %c0_i32_0 = arith.constant 0 : i32
    %c0_i32_1 = arith.constant 0 : i32
    return %c0_i32, %c0_i32_0 : i32, i32
  }
  func.func @transform_18(%arg0: i32) -> (i32, i32, i32) {
    %c0_i32 = arith.constant 0 : i32
    %c0_i32_0 = arith.constant 0 : i32
    %c0_i32_1 = arith.constant 0 : i32
    return %arg0, %c0_i32, %c0_i32_0 : i32, i32, i32
  }
}

module attributes {stable_mosaic.version = 11 : i64} {
  func.func @_transformer_layer_kernel(%arg0: i32, %arg1: memref<1x8x32xf32, #tpu.memory_space<vmem>>, %arg2: memref<2x32x16xbf16, #tpu.memory_space<vmem>>, %arg3: memref<2x1x16xf32, #tpu.memory_space<vmem>>, %arg4: memref<2x32x16xbf16, #tpu.memory_space<vmem>>, %arg5: memref<2x1x16xf32, #tpu.memory_space<vmem>>, %arg6: memref<2x32x16xbf16, #tpu.memory_space<vmem>>, %arg7: memref<2x1x16xf32, #tpu.memory_space<vmem>>, %arg8: memref<2x16x32xbf16, #tpu.memory_space<vmem>>, %arg9: memref<1x32xf32, #tpu.memory_space<vmem>>, %arg10: memref<1x32xf32, #tpu.memory_space<vmem>>, %arg11: memref<1x32xf32, #tpu.memory_space<vmem>>, %arg12: memref<32x64xbf16, #tpu.memory_space<vmem>>, %arg13: memref<1x64xf32, #tpu.memory_space<vmem>>, %arg14: memref<64x32xbf16, #tpu.memory_space<vmem>>, %arg15: memref<1x32xf32, #tpu.memory_space<vmem>>, %arg16: memref<1x32xf32, #tpu.memory_space<vmem>>, %arg17: memref<1x32xf32, #tpu.memory_space<vmem>>, %arg18: memref<1x8x32xf32, #tpu.memory_space<vmem>>) attributes {dimension_semantics = [#tpu.dimension_semantics<parallel>], iteration_bounds = array<i64: 2>, scalar_prefetch = 0 : i64, scratch_operands = 0 : i64, tpu.core_type = #tpu.core_type<tc>, window_params = [{transform_indices = @transform_0, window_bounds = array<i64: 1, 8, 32>}, {pipeline_mode = #tpu.pipeline_mode<synchronous>, transform_indices = @transform_1, window_bounds = array<i64: 2, 32, 16>}, {pipeline_mode = #tpu.pipeline_mode<synchronous>, transform_indices = @transform_2, window_bounds = array<i64: 2, 1, 16>}, {pipeline_mode = #tpu.pipeline_mode<synchronous>, transform_indices = @transform_3, window_bounds = array<i64: 2, 32, 16>}, {pipeline_mode = #tpu.pipeline_mode<synchronous>, transform_indices = @transform_4, window_bounds = array<i64: 2, 1, 16>}, {pipeline_mode = #tpu.pipeline_mode<synchronous>, transform_indices = @transform_5, window_bounds = array<i64: 2, 32, 16>}, {pipeline_mode = #tpu.pipeline_mode<synchronous>, transform_indices = @transform_6, window_bounds = array<i64: 2, 1, 16>}, {pipeline_mode = #tpu.pipeline_mode<synchronous>, transform_indices = @transform_7, window_bounds = array<i64: 2, 16, 32>}, {pipeline_mode = #tpu.pipeline_mode<synchronous>, transform_indices = @transform_8, window_bounds = array<i64: 1, 32>}, {pipeline_mode = #tpu.pipeline_mode<synchronous>, transform_indices = @transform_9, window_bounds = array<i64: 1, 32>}, {pipeline_mode = #tpu.pipeline_mode<synchronous>, transform_indices = @transform_10, window_bounds = array<i64: 1, 32>}, {pipeline_mode = #tpu.pipeline_mode<synchronous>, transform_indices = @transform_11, window_bounds = array<i64: 32, 64>}, {pipeline_mode = #tpu.pipeline_mode<synchronous>, transform_indices = @transform_12, window_bounds = array<i64: 1, 64>}, {pipeline_mode = #tpu.pipeline_mode<synchronous>, transform_indices = @transform_13, window_bounds = array<i64: 64, 32>}, {pipeline_mode = #tpu.pipeline_mode<synchronous>, transform_indices = @transform_14, window_bounds = array<i64: 1, 32>}, {pipeline_mode = #tpu.pipeline_mode<synchronous>, transform_indices = @transform_15, window_bounds = array<i64: 1, 32>}, {pipeline_mode = #tpu.pipeline_mode<synchronous>, transform_indices = @transform_16, window_bounds = array<i64: 1, 32>}, {transform_indices = @transform_17, window_bounds = array<i64: 1, 8, 32>}]} {
    %c0 = arith.constant 0 : index
    %c0_0 = arith.constant 0 : index
    %c0_1 = arith.constant 0 : index
    %0 = vector.load %arg1[%c0, %c0_0, %c0_1] : memref<1x8x32xf32, #tpu.memory_space<vmem>>, vector<1x8x32xf32>
    %1 = vector.shape_cast %0 : vector<1x8x32xf32> to vector<8x32xf32>
    %2 = arith.truncf %1 : vector<8x32xf32> to vector<8x32xbf16>
    %3 = vector.shape_cast %2 : vector<8x32xbf16> to vector<1x8x32xbf16>
    %4 = vector.shape_cast %3 : vector<1x8x32xbf16> to vector<1x8x32xbf16>
    %5 = vector.broadcast %4 : vector<1x8x32xbf16> to vector<2x8x32xbf16>
    %c0_2 = arith.constant 0 : index
    %c0_3 = arith.constant 0 : index
    %c0_4 = arith.constant 0 : index
    %6 = vector.load %arg2[%c0_2, %c0_3, %c0_4] : memref<2x32x16xbf16, #tpu.memory_space<vmem>>, vector<2x32x16xbf16>
    %cst = arith.constant dense<0.000000e+00> : vector<2x8x16xf32>
    %7 = tpu.matmul %5, %6, %cst {dimension_numbers = #tpu.dot_dimension_numbers<[2], [1], [1], [2], [0, 0, 0, 1, 1, 2], [0], [0]>} : vector<2x8x32xbf16>, vector<2x32x16xbf16>, vector<2x8x16xf32> -> vector<2x8x16xf32>
    %c0_5 = arith.constant 0 : index
    %c0_6 = arith.constant 0 : index
    %c0_7 = arith.constant 0 : index
    %8 = vector.load %arg3[%c0_5, %c0_6, %c0_7] : memref<2x1x16xf32, #tpu.memory_space<vmem>>, vector<2x1x16xf32>
    %9 = vector.broadcast %8 : vector<2x1x16xf32> to vector<2x8x16xf32>
    %10 = arith.addf %7, %9 : vector<2x8x16xf32>
    %11 = arith.truncf %10 : vector<2x8x16xf32> to vector<2x8x16xbf16>
    %c0_8 = arith.constant 0 : index
    %c0_9 = arith.constant 0 : index
    %c0_10 = arith.constant 0 : index
    %12 = vector.load %arg4[%c0_8, %c0_9, %c0_10] : memref<2x32x16xbf16, #tpu.memory_space<vmem>>, vector<2x32x16xbf16>
    %cst_11 = arith.constant dense<0.000000e+00> : vector<2x8x16xf32>
    %13 = tpu.matmul %5, %12, %cst_11 {dimension_numbers = #tpu.dot_dimension_numbers<[2], [1], [1], [2], [0, 0, 0, 1, 1, 2], [0], [0]>} : vector<2x8x32xbf16>, vector<2x32x16xbf16>, vector<2x8x16xf32> -> vector<2x8x16xf32>
    %c0_12 = arith.constant 0 : index
    %c0_13 = arith.constant 0 : index
    %c0_14 = arith.constant 0 : index
    %14 = vector.load %arg5[%c0_12, %c0_13, %c0_14] : memref<2x1x16xf32, #tpu.memory_space<vmem>>, vector<2x1x16xf32>
    %15 = vector.broadcast %14 : vector<2x1x16xf32> to vector<2x8x16xf32>
    %16 = arith.addf %13, %15 : vector<2x8x16xf32>
    %17 = arith.truncf %16 : vector<2x8x16xf32> to vector<2x8x16xbf16>
    %c0_15 = arith.constant 0 : index
    %c0_16 = arith.constant 0 : index
    %c0_17 = arith.constant 0 : index
    %18 = vector.load %arg6[%c0_15, %c0_16, %c0_17] : memref<2x32x16xbf16, #tpu.memory_space<vmem>>, vector<2x32x16xbf16>
    %cst_18 = arith.constant dense<0.000000e+00> : vector<2x8x16xf32>
    %19 = tpu.matmul %5, %18, %cst_18 {dimension_numbers = #tpu.dot_dimension_numbers<[2], [1], [1], [2], [0, 0, 0, 1, 1, 2], [0], [0]>} : vector<2x8x32xbf16>, vector<2x32x16xbf16>, vector<2x8x16xf32> -> vector<2x8x16xf32>
    %c0_19 = arith.constant 0 : index
    %c0_20 = arith.constant 0 : index
    %c0_21 = arith.constant 0 : index
    %20 = vector.load %arg7[%c0_19, %c0_20, %c0_21] : memref<2x1x16xf32, #tpu.memory_space<vmem>>, vector<2x1x16xf32>
    %21 = vector.broadcast %20 : vector<2x1x16xf32> to vector<2x8x16xf32>
    %22 = arith.addf %19, %21 : vector<2x8x16xf32>
    %23 = arith.truncf %22 : vector<2x8x16xf32> to vector<2x8x16xbf16>
    %24 = tpu.iota {dimensions = array<i32: 0>} : vector<8x8xi32>
    %25 = tpu.iota {dimensions = array<i32: 1>} : vector<8x8xi32>
    %26 = arith.subi %25, %24 : vector<8x8xi32>
    %c1_i32 = arith.constant 1 : i32
    %27 = vector.broadcast %c1_i32 : i32 to vector<8x8xi32>
    %28 = arith.cmpi slt, %26, %27 : vector<8x8xi32>
    %29 = vector.shape_cast %28 : vector<8x8xi1> to vector<1x8x8xi1>
    %cst_22 = arith.constant dense<0.000000e+00> : vector<2x8x8xf32>
    %30 = tpu.matmul %11, %17, %cst_22 {dimension_numbers = #tpu.dot_dimension_numbers<[2], [2], [1], [1], [0, 0, 0, 1, 1, 1], [0], [0]>} : vector<2x8x16xbf16>, vector<2x8x16xbf16>, vector<2x8x8xf32> -> vector<2x8x8xf32>
    %cst_23 = arith.constant 2.500000e-01 : f32
    %31 = vector.broadcast %cst_23 : f32 to vector<2x8x8xf32>
    %32 = arith.mulf %30, %31 : vector<2x8x8xf32>
    %cst_24 = arith.constant -1.000000e+32 : f32
    %33 = vector.shape_cast %29 : vector<1x8x8xi1> to vector<1x8x8xi1>
    %34 = vector.broadcast %33 : vector<1x8x8xi1> to vector<2x8x8xi1>
    %35 = vector.broadcast %cst_24 : f32 to vector<2x8x8xf32>
    %36 = arith.select %34, %32, %35 : vector<2x8x8xi1>, vector<2x8x8xf32>
    %cst_25 = arith.constant dense<0xFF800000> : vector<2x8xf32>
    %37 = vector.multi_reduction <maximumf>, %36, %cst_25 [2] : vector<2x8x8xf32> to vector<2x8xf32>
    %38 = vector.shape_cast %37 : vector<2x8xf32> to vector<2x8x1xf32>
    %39 = vector.broadcast %38 : vector<2x8x1xf32> to vector<2x8x8xf32>
    %40 = arith.subf %36, %39 : vector<2x8x8xf32>
    %41 = math.exp %40 : vector<2x8x8xf32>
    %cst_26 = arith.constant dense<0.000000e+00> : vector<2x8xf32>
    %42 = vector.multi_reduction <add>, %41, %cst_26 [2] : vector<2x8x8xf32> to vector<2x8xf32>
    %43 = vector.shape_cast %42 : vector<2x8xf32> to vector<2x8x1xf32>
    %44 = tpu.reciprocal %43 {approx = true} : vector<2x8x1xf32> -> vector<2x8x1xf32>
    %45 = vector.broadcast %44 : vector<2x8x1xf32> to vector<2x8x8xf32>
    %46 = arith.mulf %41, %45 : vector<2x8x8xf32>
    %cst_27 = arith.constant 0.000000e+00 : f32
    %47 = vector.shape_cast %29 : vector<1x8x8xi1> to vector<1x8x8xi1>
    %48 = vector.broadcast %47 : vector<1x8x8xi1> to vector<2x8x8xi1>
    %49 = vector.broadcast %cst_27 : f32 to vector<2x8x8xf32>
    %50 = arith.select %48, %46, %49 : vector<2x8x8xi1>, vector<2x8x8xf32>
    %51 = arith.truncf %50 : vector<2x8x8xf32> to vector<2x8x8xbf16>
    %cst_28 = arith.constant dense<0.000000e+00> : vector<2x8x16xf32>
    %52 = tpu.matmul %51, %23, %cst_28 {dimension_numbers = #tpu.dot_dimension_numbers<[2], [1], [1], [2], [0, 0, 0, 1, 1, 2], [0], [0]>} : vector<2x8x8xbf16>, vector<2x8x16xbf16>, vector<2x8x16xf32> -> vector<2x8x16xf32>
    %53 = arith.truncf %52 : vector<2x8x16xf32> to vector<2x8x16xbf16>
    %c0_29 = arith.constant 0 : index
    %c0_30 = arith.constant 0 : index
    %c0_31 = arith.constant 0 : index
    %54 = vector.load %arg8[%c0_29, %c0_30, %c0_31] : memref<2x16x32xbf16, #tpu.memory_space<vmem>>, vector<2x16x32xbf16>
    %cst_32 = arith.constant dense<0.000000e+00> : vector<2x8x32xf32>
    %55 = tpu.matmul %53, %54, %cst_32 {dimension_numbers = #tpu.dot_dimension_numbers<[2], [1], [1], [2], [0, 0, 0, 1, 1, 2], [0], [0]>} : vector<2x8x16xbf16>, vector<2x16x32xbf16>, vector<2x8x32xf32> -> vector<2x8x32xf32>
    %cst_33 = arith.constant dense<0.000000e+00> : vector<8x32xf32>
    %56 = vector.multi_reduction <add>, %55, %cst_33 [0] : vector<2x8x32xf32> to vector<8x32xf32>
    %c0_34 = arith.constant 0 : index
    %c0_35 = arith.constant 0 : index
    %57 = vector.load %arg9[%c0_34, %c0_35] : memref<1x32xf32, #tpu.memory_space<vmem>>, vector<1x32xf32>
    %58 = vector.shape_cast %57 : vector<1x32xf32> to vector<32xf32>
    %59 = vector.shape_cast %58 : vector<32xf32> to vector<1x32xf32>
    %60 = vector.broadcast %59 : vector<1x32xf32> to vector<8x32xf32>
    %61 = arith.addf %56, %60 : vector<8x32xf32>
    %62 = arith.addf %1, %61 : vector<8x32xf32>
    %cst_36 = arith.constant dense<0.000000e+00> : vector<8xf32>
    %63 = vector.multi_reduction <add>, %62, %cst_36 [1] : vector<8x32xf32> to vector<8xf32>
    %64 = vector.shape_cast %63 : vector<8xf32> to vector<8x1xf32>
    %cst_37 = arith.constant 3.200000e+01 : f32
    %65 = vector.broadcast %cst_37 : f32 to vector<8x1xf32>
    %66 = arith.divf %64, %65 : vector<8x1xf32>
    %67 = vector.broadcast %66 : vector<8x1xf32> to vector<8x32xf32>
    %68 = arith.subf %62, %67 : vector<8x32xf32>
    %69 = arith.mulf %68, %68 : vector<8x32xf32>
    %cst_38 = arith.constant dense<0.000000e+00> : vector<8xf32>
    %70 = vector.multi_reduction <add>, %69, %cst_38 [1] : vector<8x32xf32> to vector<8xf32>
    %71 = vector.shape_cast %70 : vector<8xf32> to vector<8x1xf32>
    %cst_39 = arith.constant 3.200000e+01 : f32
    %72 = vector.broadcast %cst_39 : f32 to vector<8x1xf32>
    %73 = arith.divf %71, %72 : vector<8x1xf32>
    %74 = vector.broadcast %66 : vector<8x1xf32> to vector<8x32xf32>
    %75 = arith.subf %62, %74 : vector<8x32xf32>
    %cst_40 = arith.constant 9.99999974E-6 : f32
    %76 = vector.broadcast %cst_40 : f32 to vector<8x1xf32>
    %77 = arith.addf %73, %76 : vector<8x1xf32>
    %78 = math.rsqrt %77 : vector<8x1xf32>
    %79 = vector.broadcast %78 : vector<8x1xf32> to vector<8x32xf32>
    %80 = arith.mulf %75, %79 : vector<8x32xf32>
    %c0_41 = arith.constant 0 : index
    %c0_42 = arith.constant 0 : index
    %81 = vector.load %arg10[%c0_41, %c0_42] : memref<1x32xf32, #tpu.memory_space<vmem>>, vector<1x32xf32>
    %82 = vector.shape_cast %81 : vector<1x32xf32> to vector<32xf32>
    %83 = vector.shape_cast %82 : vector<32xf32> to vector<1x32xf32>
    %84 = vector.broadcast %83 : vector<1x32xf32> to vector<8x32xf32>
    %85 = arith.mulf %80, %84 : vector<8x32xf32>
    %c0_43 = arith.constant 0 : index
    %c0_44 = arith.constant 0 : index
    %86 = vector.load %arg11[%c0_43, %c0_44] : memref<1x32xf32, #tpu.memory_space<vmem>>, vector<1x32xf32>
    %87 = vector.shape_cast %86 : vector<1x32xf32> to vector<32xf32>
    %88 = vector.shape_cast %87 : vector<32xf32> to vector<1x32xf32>
    %89 = vector.broadcast %88 : vector<1x32xf32> to vector<8x32xf32>
    %90 = arith.addf %85, %89 : vector<8x32xf32>
    %91 = arith.truncf %90 : vector<8x32xf32> to vector<8x32xbf16>
    %c0_45 = arith.constant 0 : index
    %c0_46 = arith.constant 0 : index
    %92 = vector.load %arg12[%c0_45, %c0_46] : memref<32x64xbf16, #tpu.memory_space<vmem>>, vector<32x64xbf16>
    %cst_47 = arith.constant dense<0.000000e+00> : vector<8x64xf32>
    %93 = tpu.matmul %91, %92, %cst_47 {dimension_numbers = #tpu.dot_dimension_numbers<[1], [0], [0], [1], [0, 0, 1, 1], [], []>} : vector<8x32xbf16>, vector<32x64xbf16>, vector<8x64xf32> -> vector<8x64xf32>
    %c0_48 = arith.constant 0 : index
    %c0_49 = arith.constant 0 : index
    %94 = vector.load %arg13[%c0_48, %c0_49] : memref<1x64xf32, #tpu.memory_space<vmem>>, vector<1x64xf32>
    %95 = vector.shape_cast %94 : vector<1x64xf32> to vector<64xf32>
    %96 = vector.shape_cast %95 : vector<64xf32> to vector<1x64xf32>
    %97 = vector.broadcast %96 : vector<1x64xf32> to vector<8x64xf32>
    %98 = arith.addf %93, %97 : vector<8x64xf32>
    %cst_50 = arith.constant 0.000000e+00 : f32
    %99 = vector.broadcast %cst_50 : f32 to vector<8x64xf32>
    %100 = arith.maximumf %98, %99 : vector<8x64xf32>
    %101 = arith.truncf %100 : vector<8x64xf32> to vector<8x64xbf16>
    %c0_51 = arith.constant 0 : index
    %c0_52 = arith.constant 0 : index
    %102 = vector.load %arg14[%c0_51, %c0_52] : memref<64x32xbf16, #tpu.memory_space<vmem>>, vector<64x32xbf16>
    %cst_53 = arith.constant dense<0.000000e+00> : vector<8x32xf32>
    %103 = tpu.matmul %101, %102, %cst_53 {dimension_numbers = #tpu.dot_dimension_numbers<[1], [0], [0], [1], [0, 0, 1, 1], [], []>} : vector<8x64xbf16>, vector<64x32xbf16>, vector<8x32xf32> -> vector<8x32xf32>
    %c0_54 = arith.constant 0 : index
    %c0_55 = arith.constant 0 : index
    %104 = vector.load %arg15[%c0_54, %c0_55] : memref<1x32xf32, #tpu.memory_space<vmem>>, vector<1x32xf32>
    %105 = vector.shape_cast %104 : vector<1x32xf32> to vector<32xf32>
    %106 = vector.shape_cast %105 : vector<32xf32> to vector<1x32xf32>
    %107 = vector.broadcast %106 : vector<1x32xf32> to vector<8x32xf32>
    %108 = arith.addf %103, %107 : vector<8x32xf32>
    %109 = arith.addf %90, %108 : vector<8x32xf32>
    %cst_56 = arith.constant dense<0.000000e+00> : vector<8xf32>
    %110 = vector.multi_reduction <add>, %109, %cst_56 [1] : vector<8x32xf32> to vector<8xf32>
    %111 = vector.shape_cast %110 : vector<8xf32> to vector<8x1xf32>
    %cst_57 = arith.constant 3.200000e+01 : f32
    %112 = vector.broadcast %cst_57 : f32 to vector<8x1xf32>
    %113 = arith.divf %111, %112 : vector<8x1xf32>
    %114 = vector.broadcast %113 : vector<8x1xf32> to vector<8x32xf32>
    %115 = arith.subf %109, %114 : vector<8x32xf32>
    %116 = arith.mulf %115, %115 : vector<8x32xf32>
    %cst_58 = arith.constant dense<0.000000e+00> : vector<8xf32>
    %117 = vector.multi_reduction <add>, %116, %cst_58 [1] : vector<8x32xf32> to vector<8xf32>
    %118 = vector.shape_cast %117 : vector<8xf32> to vector<8x1xf32>
    %cst_59 = arith.constant 3.200000e+01 : f32
    %119 = vector.broadcast %cst_59 : f32 to vector<8x1xf32>
    %120 = arith.divf %118, %119 : vector<8x1xf32>
    %121 = vector.broadcast %113 : vector<8x1xf32> to vector<8x32xf32>
    %122 = arith.subf %109, %121 : vector<8x32xf32>
    %cst_60 = arith.constant 9.99999974E-6 : f32
    %123 = vector.broadcast %cst_60 : f32 to vector<8x1xf32>
    %124 = arith.addf %120, %123 : vector<8x1xf32>
    %125 = math.rsqrt %124 : vector<8x1xf32>
    %126 = vector.broadcast %125 : vector<8x1xf32> to vector<8x32xf32>
    %127 = arith.mulf %122, %126 : vector<8x32xf32>
    %c0_61 = arith.constant 0 : index
    %c0_62 = arith.constant 0 : index
    %128 = vector.load %arg16[%c0_61, %c0_62] : memref<1x32xf32, #tpu.memory_space<vmem>>, vector<1x32xf32>
    %129 = vector.shape_cast %128 : vector<1x32xf32> to vector<32xf32>
    %130 = vector.shape_cast %129 : vector<32xf32> to vector<1x32xf32>
    %131 = vector.broadcast %130 : vector<1x32xf32> to vector<8x32xf32>
    %132 = arith.mulf %127, %131 : vector<8x32xf32>
    %c0_63 = arith.constant 0 : index
    %c0_64 = arith.constant 0 : index
    %133 = vector.load %arg17[%c0_63, %c0_64] : memref<1x32xf32, #tpu.memory_space<vmem>>, vector<1x32xf32>
    %134 = vector.shape_cast %133 : vector<1x32xf32> to vector<32xf32>
    %135 = vector.shape_cast %134 : vector<32xf32> to vector<1x32xf32>
    %136 = vector.broadcast %135 : vector<1x32xf32> to vector<8x32xf32>
    %137 = arith.addf %132, %136 : vector<8x32xf32>
    %138 = vector.shape_cast %137 : vector<8x32xf32> to vector<1x8x32xf32>
    %c0_65 = arith.constant 0 : index
    %c0_66 = arith.constant 0 : index
    %c0_67 = arith.constant 0 : index
    %139 = vector.load %arg18[%c0_65, %c0_66, %c0_67] : memref<1x8x32xf32, #tpu.memory_space<vmem>>, vector<1x8x32xf32>
    tpu.vector_store %arg18[%c0_65, %c0_66, %c0_67], %138 {strides = array<i32>} : memref<1x8x32xf32, #tpu.memory_space<vmem>>, vector<1x8x32xf32>,
    return
  }
  func.func @transform_0(%arg0: i32) -> (i32, i32, i32) {
    %c0_i32 = arith.constant 0 : i32
    %c0_i32_0 = arith.constant 0 : i32
    %c0_i32_1 = arith.constant 0 : i32
    return %arg0, %c0_i32, %c0_i32_0 : i32, i32, i32
  }
  func.func @transform_1(%arg0: i32) -> (i32, i32, i32) {
    %c0_i32 = arith.constant 0 : i32
    %c0_i32_0 = arith.constant 0 : i32
    %c0_i32_1 = arith.constant 0 : i32
    %c0_i32_2 = arith.constant 0 : i32
    return %c0_i32, %c0_i32_0, %c0_i32_1 : i32, i32, i32
  }
  func.func @transform_2(%arg0: i32) -> (i32, i32, i32) {
    %c0_i32 = arith.constant 0 : i32
    %c0_i32_0 = arith.constant 0 : i32
    %c0_i32_1 = arith.constant 0 : i32
    %c0_i32_2 = arith.constant 0 : i32
    return %c0_i32, %c0_i32_0, %c0_i32_1 : i32, i32, i32
  }
  func.func @transform_3(%arg0: i32) -> (i32, i32, i32) {
    %c0_i32 = arith.constant 0 : i32
    %c0_i32_0 = arith.constant 0 : i32
    %c0_i32_1 = arith.constant 0 : i32
    %c0_i32_2 = arith.constant 0 : i32
    return %c0_i32, %c0_i32_0, %c0_i32_1 : i32, i32, i32
  }
  func.func @transform_4(%arg0: i32) -> (i32, i32, i32) {
    %c0_i32 = arith.constant 0 : i32
    %c0_i32_0 = arith.constant 0 : i32
    %c0_i32_1 = arith.constant 0 : i32
    %c0_i32_2 = arith.constant 0 : i32
    return %c0_i32, %c0_i32_0, %c0_i32_1 : i32, i32, i32
  }
  func.func @transform_5(%arg0: i32) -> (i32, i32, i32) {
    %c0_i32 = arith.constant 0 : i32
    %c0_i32_0 = arith.constant 0 : i32
    %c0_i32_1 = arith.constant 0 : i32
    %c0_i32_2 = arith.constant 0 : i32
    return %c0_i32, %c0_i32_0, %c0_i32_1 : i32, i32, i32
  }
  func.func @transform_6(%arg0: i32) -> (i32, i32, i32) {
    %c0_i32 = arith.constant 0 : i32
    %c0_i32_0 = arith.constant 0 : i32
    %c0_i32_1 = arith.constant 0 : i32
    %c0_i32_2 = arith.constant 0 : i32
    return %c0_i32, %c0_i32_0, %c0_i32_1 : i32, i32, i32
  }
  func.func @transform_7(%arg0: i32) -> (i32, i32, i32) {
    %c0_i32 = arith.constant 0 : i32
    %c0_i32_0 = arith.constant 0 : i32
    %c0_i32_1 = arith.constant 0 : i32
    %c0_i32_2 = arith.constant 0 : i32
    return %c0_i32, %c0_i32_0, %c0_i32_1 : i32, i32, i32
  }
  func.func @transform_8(%arg0: i32) -> (i32, i32) {
    %c0_i32 = arith.constant 0 : i32
    %c0_i32_0 = arith.constant 0 : i32
    %c0_i32_1 = arith.constant 0 : i32
    return %c0_i32, %c0_i32_0 : i32, i32
  }
  func.func @transform_9(%arg0: i32) -> (i32, i32) {
    %c0_i32 = arith.constant 0 : i32
    %c0_i32_0 = arith.constant 0 : i32
    %c0_i32_1 = arith.constant 0 : i32
    return %c0_i32, %c0_i32_0 : i32, i32
  }
  func.func @transform_10(%arg0: i32) -> (i32, i32) {
    %c0_i32 = arith.constant 0 : i32
    %c0_i32_0 = arith.constant 0 : i32
    %c0_i32_1 = arith.constant 0 : i32
    return %c0_i32, %c0_i32_0 : i32, i32
  }
  func.func @transform_11(%arg0: i32) -> (i32, i32) {
    %c0_i32 = arith.constant 0 : i32
    %c0_i32_0 = arith.constant 0 : i32
    %c0_i32_1 = arith.constant 0 : i32
    return %c0_i32, %c0_i32_0 : i32, i32
  }
  func.func @transform_12(%arg0: i32) -> (i32, i32) {
    %c0_i32 = arith.constant 0 : i32
    %c0_i32_0 = arith.constant 0 : i32
    %c0_i32_1 = arith.constant 0 : i32
    return %c0_i32, %c0_i32_0 : i32, i32
  }
  func.func @transform_13(%arg0: i32) -> (i32, i32) {
    %c0_i32 = arith.constant 0 : i32
    %c0_i32_0 = arith.constant 0 : i32
    %c0_i32_1 = arith.constant 0 : i32
    return %c0_i32, %c0_i32_0 : i32, i32
  }
  func.func @transform_14(%arg0: i32) -> (i32, i32) {
    %c0_i32 = arith.constant 0 : i32
    %c0_i32_0 = arith.constant 0 : i32
    %c0_i32_1 = arith.constant 0 : i32
    return %c0_i32, %c0_i32_0 : i32, i32
  }
  func.func @transform_15(%arg0: i32) -> (i32, i32) {
    %c0_i32 = arith.constant 0 : i32
    %c0_i32_0 = arith.constant 0 : i32
    %c0_i32_1 = arith.constant 0 : i32
    return %c0_i32, %c0_i32_0 : i32, i32
  }
  func.func @transform_16(%arg0: i32) -> (i32, i32) {
    %c0_i32 = arith.constant 0 : i32
    %c0_i32_0 = arith.constant 0 : i32
    %c0_i32_1 = arith.constant 0 : i32
    return %c0_i32, %c0_i32_0 : i32, i32
  }
  func.func @transform_17(%arg0: i32) -> (i32, i32, i32) {
    %c0_i32 = arith.constant 0 : i32
    %c0_i32_0 = arith.constant 0 : i32
    %c0_i32_1 = arith.constant 0 : i32
    return %arg0, %c0_i32, %c0_i32_0 : i32, i32, i32
  }
}

</mosaic_0001>

<bundles_post_ra>
// kernel: architecture_forward.4
= control target key start
LH: loop header
LB: loop body
LE: loop exit
PB: predicated region body
PF: predicated region fallthrough
CT: control target
= control target key end

     0   :  { %s1052_s17 = smov 0   ;;  %s1185_s0 = inlined_call_operand.vmem [shape: f32[2,8,32], index: 0, kind: input, shape index: {}]   ;;  %s1186_s1 = inlined_call_operand.vmem [shape: bf16[2,32,16], index: 1, kind: input, shape index: {}]   ;;  %s1187_s2 = inlined_call_operand.vmem [shape: f32[2,1,16], index: 2, kind: input, shape index: {}]   ;;  %s1188_s3 = inlined_call_operand.vmem [shape: bf16[2,32,16], index: 3, kind: input, shape index: {}]   ;;  %s1189_s4 = inlined_call_operand.vmem [shape: f32[2,1,16], index: 4, kind: input, shape index: {}]   ;;  %s1190_s5 = inlined_call_operand.vmem [shape: bf16[2,32,16], index: 5, kind: input, shape index: {}]   ;;  %s1191_s6 = inlined_call_operand.vmem [shape: f32[2,1,16], index: 6, kind: input, shape index: {}]   ;;  %s1192_s7 = inlined_call_operand.vmem [shape: bf16[2,16,32], index: 7, kind: input, shape index: {}]   ;;  %s1193_s8 = inlined_call_operand.vmem [shape: f32[1,32], index: 8, kind: input, shape index: {}]   ;;  %s1194_s9 = inlined_call_operand.vmem [shape: f32[1,32], index: 9, kind: input, shape index: {}]   ;;  %s1195_s10 = inlined_call_operand.vmem [shape: f32[1,32], index: 10, kind: input, shape index: {}]   ;;  %s1196_s11 = inlined_call_operand.vmem [shape: f32[2,8,32], index: 11, kind: output, shape index: {}]  }
   0x1 LB: > { %s862_s18 = sadd.s32 4294967295, %s989_s17   ;;  %p866_p0 = scmp.ge.s32.totalorder %s989_s17, 1  ;;  %s989_s17 = sphi %s1052_s17, %s21_s17  }
   0x2   : > { %p336_p1 = scmp.lt.s32.totalorder %s989_s17, 3 }
   0x4   : > { %p337_p2 = pnand %p866_p0, %p336_p1 }
   0x5   : > { %p374_p3 = scmp.lt.s32.totalorder (!%p337_p2), %s862_s18, 1 }
   0x6   : > { %340 = sbr.rel (%p337_p2) target bundleno = 1099 (0x44b), region = 64 }
   0xb   : > { %v944_v0 = vld [vmem:[%s1188_s3 + $0x8] sm:$0xff]  ;;  %v946_v1 = vld [vmem:[%s1188_s3 + $0x18] sm:$0xff]  ;;  %v943_v2 = vld [vmem:[%s1188_s3] sm:$0xff]  ;;  %s1200_s18 = smov (!%p374_p3, %s862_s18), 1  ;;  %vm413_vm0 = vcmask 261120   ;;  %vm599_vm1 = vcmask 130048   ;;  %v593_v36 = vlaneseq }
   0xc   : > { %v940_v3 = vld [vmem:[%s1186_s1 + $0x8] sm:$0xff]  ;;  %491 = vmatpush.bf16.msra.mxu2 %v944_v0  ;;  %516 = vmatpush.bf16.msra.mxu3 %v946_v1  ;;  %v945_v4 = vld [vmem:[%s1188_s3 + $0x10] sm:$0xff]  ;;  %v942_v5 = vld [vmem:[%s1186_s1 + $0x18] sm:$0xff]  ;;  %s867_s14 = sshll.u32 %s1200_s18, 3  ;;  %vm644_vm3 = vcmask 64512   ;;  %vm674_vm4 = vcmask 1043456  }
   0xd   : > { %423 = vmatpush.bf16.msra.mxu0 %v940_v3  ;;  %v939_v6 = vld [vmem:[%s1186_s1] sm:$0xff]  ;;  %448 = vmatpush.bf16.msra.mxu1 %v942_v5  ;;  %v941_v7 = vld [vmem:[%s1186_s1 + $0x10] sm:$0xff]  ;;  %s377_s21 = scalar_lea.vmem %s1185_s0, %s867_s14  ;;  %v948_v32 = vld [vmem:[%s1190_s5 + $0x8] sm:$0xff]  ;;  %v594_v37 = vshrl.u32 %v593_v36, 7  ;;  %v596_v38 = vand.u32 127, %v593_v36  ;;  %s381_s22 = scalar_lea.vmem %s1196_s11, %s867_s14 }
   0xe   : > { %v1092_v8 = vld [vmem:[%s377_s21] sm:$0xff]  ;;  %v950_v33 = vld [vmem:[%s1190_s5 + $0x18] sm:$0xff]  ;;  %v949_v35 = vld [vmem:[%s1190_s5 + $0x10] sm:$0xff] }
   0xf   : > { %v384_v9 = vpack.c.bf16 %v1092_v8, %v1092_v8  ;;  %v962_v12 = vld [vmem:[%s1189_s4] ss:$0 sm:$0xff]  ;;  %v963_v13 = vld [vmem:[%s1189_s4 + $0x1] ss:$0 sm:$0xff]  ;;  %v597_v39 = vsub.s32 %v596_v38, %v594_v37 }
  0x10   : > { %492 = vmatpush.bf16.msra.mxu2 %v943_v2  ;;  %517 = vmatpush.bf16.msra.mxu3 %v945_v4  ;;  %v964_v18 = vld [vmem:[%s1187_s2] ss:$0 sm:$0xff]  ;;  %v965_v19 = vld [vmem:[%s1187_s2 + $0x1] ss:$0 sm:$0xff] }
  0x11   : > { %424 = vmatpush.bf16.msra.mxu0 %v939_v6  ;;  %449 = vmatpush.bf16.msra.mxu1 %v941_v7  ;;  %v947_v34 = vld [vmem:[%s1190_s5] sm:$0xff]  ;;  %vm1130_vm2 = vcmp.lt.s32.totalorder %v597_v39, 1  ;;  %v991_v39 = vmov 32.0  }
  0x12   : > { %v966_v51 = vld [vmem:[%s1191_s6] ss:$0 sm:$0xff]  ;;  %v967_v52 = vld [vmem:[%s1191_s6 + $0x1] ss:$0 sm:$0xff] }
  0x13   : > { %895 = vmatmul.msk.bf16.vlgmr.msra.gmra.mxu2 %vm413_vm0, %v384_v9  ;;  %904 = vmatmul.msk.bf16.vlgmr.msra.gmra.mxu3 %vm413_vm0, %v384_v9 }
  0x14   : > { %877 = vmatmul.msk.bf16.vlgmr.msra.gmra.mxu0 %vm413_vm0, %v384_v9  ;;  %886 = vmatmul.msk.bf16.vlgmr.msra.gmra.mxu1 %vm413_vm0, %v384_v9 }
  0x15   : > { %559 = vmatpush.bf16.msrb.mxu0 %v948_v32  ;;  %584 = vmatpush.bf16.msrb.mxu1 %v950_v33 }
  0x19   : > { %560 = vmatpush.bf16.msrb.mxu0 %v947_v34  ;;  %585 = vmatpush.bf16.msrb.mxu1 %v949_v35 }
  0x24   : > { %913 = vmatmul.msk.bf16.vlgmr.msrb.gmra.mxu0 %vm413_vm0, %v384_v9  ;;  %922 = vmatmul.msk.bf16.vlgmr.msrb.gmra.mxu1 %vm413_vm0, %v384_v9 }
  0x91   : > { %v426_v10 = vpop.f32.mrf.mxu0  ;;  %v451_v11 = vpop.f32.mrf.mxu1 }
  0x92   : > { %v427_v25 = vadd.f32 %v964_v18, %v426_v10  ;;  %v452_v27 = vadd.f32 %v965_v19, %v451_v11 }
  0x94   : > { %v455_v30 = vpack.c.bf16 %v427_v25, %v427_v25  ;;  %v456_v31 = vpack.c.bf16 %v452_v27, %v452_v27 }
  0x96   : > { %v494_v14 = vpop.f32.mrf.mxu2  ;;  %v519_v15 = vpop.f32.mrf.mxu3 }
  0x97   : > { %v495_v16 = vadd.f32 %v962_v12, %v494_v14  ;;  %v520_v17 = vadd.f32 %v963_v13, %v519_v15 }
  0x99   : > { %v523_v20 = vpack.c.bf16 %v495_v16, %v495_v16  ;;  %v524_v21 = vpack.c.bf16 %v520_v17, %v520_v17  ;;  %v428_v22 = vpop.f32.mrf.mxu0  ;;  %v453_v23 = vpop.f32.mrf.mxu1 }
  0x9b   : > { %v604_v24 = vsel %vm599_vm1, %v523_v20, 0  ;;  %v623_v26 = vsel %vm599_vm1, %v524_v21, 0  ;;  %v951_v20 = vld [vmem:[%s1192_s7] sm:$0xff]  ;;  %v952_v21 = vld [vmem:[%s1192_s7 + $0x8] sm:$0xff] }
  0x9c   : > { %613 = vmatpush.bf16.xpose.msrb.mxu2 %v604_v24  ;;  %632 = vmatpush.bf16.xpose.msrb.mxu3 %v623_v26 }
  0x9e   : > { %v496_v28 = vpop.f32.mrf.mxu2  ;;  %v521_v29 = vpop.f32.mrf.mxu3 }
  0xa1   : > { %v562_v53 = vpop.f32.mrf.mxu0  ;;  %v587_v54 = vpop.f32.mrf.mxu1 }
  0xa2   : > { %v563_v55 = vadd.f32 %v966_v51, %v562_v53  ;;  %v588_v56 = vadd.f32 %v967_v52, %v587_v54 }
  0xa3   : > { %923 = vmatmul.msk.bf16.vlgmr.msrb.gmra.mxu2 %vm599_vm1, %v455_v30  ;;  %924 = vmatmul.msk.bf16.vlgmr.msrb.gmra.mxu3 %vm599_vm1, %v456_v31  ;;  %v968_v31 = vld [vmem:[%s1193_s8] ss:$0 sm:$0xff] }
  0xa4   : > { %v591_v57 = vpack.c.bf16 %v563_v55, %v563_v55  ;;  %v592_v58 = vpack.c.bf16 %v588_v56, %v588_v56  ;;  %732 = vmatpush.bf16.msra.mxu2 %v951_v20  ;;  %754 = vmatpush.bf16.msra.mxu3 %v952_v21 }
  0xa6   : > { %v676_v60 = vsel %vm674_vm4, %v591_v57, 0  ;;  %v695_v61 = vsel %vm674_vm4, %v592_v58, 0 }
  0xa7   : > { %685 = vmatpush.bf16.msra.mxu0 %v676_v60  ;;  %704 = vmatpush.bf16.msra.mxu1 %v695_v61  ;;  %v970_v61 = vld [vmem:[%s1195_s10] ss:$0 sm:$0xff] }
  0xa9   : > { %v564_v0 = vpop.f32.mrf.mxu0  ;;  %v589_v1 = vpop.f32.mrf.mxu1 }
 0x126   : > { %v615_v40 = vpop.f32.mrf.mxu2  ;;  %v634_v42 = vpop.f32.mrf.mxu3 }
 0x127   : > { %v638_v43 = vmul.f32 0.25, %v615_v40  ;;  %v639_v45 = vmul.f32 0.25, %v634_v42 }
 0x129   : > { %v642_v44 = vsel %vm1130_vm2, %v638_v43, -1e+32  ;;  %v643_v47 = vsel %vm1130_vm2, %v639_v45, -1e+32 }
 0x12a   : > { %v645_v46 = vsel %vm644_vm3, %v642_v44, -inf  ;;  %v648_v50 = vsel %vm644_vm3, %v643_v47, -inf }
 0x12b   : > { %646 = vmax.xlane.f32.xlu0 %v645_v46 }
 0x12e   : > { %v617_v48 = vpop.f32.mrf.mxu2  ;;  %v636_v49 = vpop.f32.mrf.mxu3 }
 0x133   : > { %649 = vmax.xlane.f32.xlu0 %v648_v50 }
 0x19e   : > { %v647_v59 = vpop.xlane.xlu0 %646 }
 0x19f   : > { %v651_v62 = vsub.f32 %v642_v44, %v647_v59  ;;  %v969_v59 = vld [vmem:[%s1194_s9] ss:$0 sm:$0xff] }
 0x1a1   : > { %v653_v63 = vmul.f32 1.442695, %v651_v62 }
 0x1a3   : > { %971 = vpow2.f32 %v653_v63 }
 0x1a6   : > { %v650_v2 = vpop.xlane.xlu0 %649 }
 0x1a7   : > { %v652_v3 = vsub.f32 %v643_v47, %v650_v2 }
 0x1a9   : > { %v972_v4 = vpop.eup %971  ;;  %v655_v5 = vmul.f32 1.442695, %v652_v3 }
 0x1aa   : > { %v657_v6 = vsel %vm644_vm3, %v972_v4, 0.0 }
 0x1ab   : > { %973 = vpow2.f32 %v655_v5  ;;  %658 = vadd.xlane.f32.xlu1 %v657_v6 }
 0x1b1   : > { %v974_v7 = vpop.eup %973 }
 0x1b2   : > { %v660_v9 = vsel %vm644_vm3, %v974_v7, 0.0 }
 0x1b3   : > { %661 = vadd.xlane.f32.xlu1 %v660_v9 }
 0x21e   : > { %v659_v10 = vpop.xlane.xlu1 %658 }
 0x21f   : > { %975 = vrcp.f32 %v659_v10 }
 0x225   : > { %v976_v11 = vpop.eup %975 }
 0x226   : > { %v665_v12 = vmul.f32 %v976_v11, %v972_v4  ;;  %v662_v13 = vpop.xlane.xlu1 %661 }
 0x227   : > { %977 = vrcp.f32 %v662_v13 }
 0x228   : > { %v667_v14 = vsel %vm1130_vm2, %v665_v12, 0.0  ;;  %979 = vrcp.f32 %v991_v39 }
 0x229   : > { %v669_v15 = vpack.c.bf16 %v667_v14, %v667_v14 }
 0x22b   : > { %925 = vmatmul.msk.bf16.vlgmr.msra.gmra.mxu0 %vm644_vm3, %v669_v15 }
 0x22d   : > { %v978_v16 = vpop.eup %977 }
 0x22e   : > { %v666_v17 = vmul.f32 %v978_v16, %v974_v7  ;;  %v980_v40 = vpop.eup %979 }
 0x22f   : > { %v773_v41 = vmul.f32 32.0, %v980_v40  ;;  %vm777_vm5 = vweird.f32 %v980_v40 }
 0x230   : > { %v668_v18 = vsel %vm1130_vm2, %v666_v17, 0.0 }
 0x231   : > { %v670_v19 = vpack.c.bf16 %v668_v18, %v668_v18  ;;  %v774_v42 = vsub.f32 1.0, %v773_v41 }
 0x233   : > { %926 = vmatmul.msk.bf16.vlgmr.msra.gmra.mxu1 %vm644_vm3, %v670_v19  ;;  %v775_v43 = vmul.f32 %v980_v40, %v774_v42 }
 0x235   : > { %v776_v44 = vadd.f32 %v980_v40, %v775_v43 }
 0x237   : > { %v778_v45 = vsel %vm777_vm5, %v980_v40, %v776_v44 }
 0x2a8   : > { %v687_v22 = vpop.f32.mrf.mxu0 }
 0x2a9   : > { %v710_v23 = vpack.c.bf16 %v687_v22, %v687_v22 }
 0x2ab   : > { %931 = vmatmul.msk.bf16.vlgmr.msra.gmra.mxu2 %vm599_vm1, %v710_v23 }
 0x2b0   : > { %v689_v24 = vpop.f32.mrf.mxu0  ;;  %v706_v25 = vpop.f32.mrf.mxu1 }
 0x2b1   : > { %v711_v26 = vpack.c.bf16 %v706_v25, %v706_v25 }
 0x2b3   : > { %936 = vmatmul.msk.bf16.vlgmr.msra.gmra.mxu3 %vm599_vm1, %v711_v26 }
 0x2b8   : > { %v708_v27 = vpop.f32.mrf.mxu1 }
 0x32e   : > { %v734_v28 = vpop.f32.mrf.mxu2 }
 0x32f   : > { %v760_v32 = vsel %vm413_vm0, %v734_v28, 0.0 }
 0x336   : > { %v736_v29 = vpop.f32.mrf.mxu2  ;;  %v756_v30 = vpop.f32.mrf.mxu3 }
 0x337   : > { %v761_v33 = vsel %vm413_vm0, %v756_v30, 0.0 }
 0x338   : > { %v762_v34 = vadd.f32 %v761_v33, %v760_v32 }
 0x33a   : > { %v767_v35 = vadd.f32 %v968_v31, %v762_v34 }
 0x33c   : > { %v768_v36 = vadd.f32 %v767_v35, %v1092_v8 }
 0x33e   : > { %v758_v37 = vpop.f32.mrf.mxu3  ;;  %v769_v38 = vsel %vm413_vm0, %v768_v36, 0.0 }
 0x33f   : > { %770 = vadd.xlane.f32.xlu2 %v769_v38 }
 0x3b2   : > { %v771_v46 = vpop.xlane.xlu2 %770 }
 0x3b3   : > { %v779_v47 = vmul.f32 %v778_v45, %v771_v46 }
 0x3b5   : > { %v780_v48 = vsub.f32 %v768_v36, %v779_v47 }
 0x3b7   : > { %v781_v49 = vmul.f32 %v780_v48, %v780_v48 }
 0x3b9   : > { %v782_v50 = vsel %vm413_vm0, %v781_v49, 0.0 }
 0x3ba   : > { %783 = vadd.xlane.f32.xlu2 %v782_v50 }
 0x42d   : > { %v784_v8 = vpop.xlane.xlu2 %783 }
 0x42e   : > { %v785_v51 = vmul.f32 %v784_v8, %v778_v45 }
 0x430   : > { %v786_v52 = vadd.f32 1e-05, %v785_v51 }
 0x432   : > { %981 = vrsqrt.f32 %v786_v52  ;;  %vm793_vm7 = vweird.f32 %v786_v52 }
 0x438   : > { %v982_v53 = vpop.eup %981 }
 0x439   : > { %v788_v54 = vmul.f32 %v982_v53, %v786_v52  ;;  %vm794_vm6 = vweird.f32 %v982_v53 }
 0x43a   : > { %vm795_vm8 = vmor %vm793_vm7, %vm794_vm6 }
 0x43b   : > { %v789_v55 = vmul.f32 %v982_v53, %v788_v54 }
 0x43d   : > { %v790_v56 = vmul.f32 0.5, %v789_v55 }
 0x43f   : > { %v791_v57 = vsub.f32 1.5, %v790_v56 }
 0x441   : > { %v792_v58 = vmul.f32 %v982_v53, %v791_v57 }
 0x443   : > { %v796_v60 = vsel %vm795_vm8, %v982_v53, %v792_v58 }
 0x444   : > { %v797_v62 = vmul.f32 %v796_v60, %v780_v48 }
 0x446   : > { %v802_v63 = vmul.f32 %v969_v59, %v797_v62 }
 0x448   : > { %v807_v0 = vadd.f32 %v970_v61, %v802_v63 }
 0x44a   : > { %808 = vst.msk [vmem:[%s381_s22] sm:$0xff] %vm413_vm0, %v807_v0 }
 0x44b PF: > { %s21_s17 = sadd.s32 1, %s989_s17  }
 0x44c   : > { %p18_p4 = scmp.ge.s32.totalorder %s21_s17, 4  }
 0x44e   :  { %20 = sbr.rel (!%p18_p4) target bundleno = 1 (0x1), region = 94 }

// kernel: architecture_forward.3
= control target key start
LH: loop header
LB: loop body
LE: loop exit
PB: predicated region body
PF: predicated region fallthrough
CT: control target
= control target key end

     0   :  { %s1407_s24 = smov 0   ;;  %s1573_s0 = inlined_call_operand.vmem [shape: f32[2,8,32], index: 0, kind: input, shape index: {}]   ;;  %s1574_s1 = inlined_call_operand.vmem [shape: bf16[2,32,16], index: 1, kind: input, shape index: {}]   ;;  %s1575_s2 = inlined_call_operand.vmem [shape: f32[2,1,16], index: 2, kind: input, shape index: {}]   ;;  %s1576_s3 = inlined_call_operand.vmem [shape: bf16[2,32,16], index: 3, kind: input, shape index: {}]   ;;  %s1577_s4 = inlined_call_operand.vmem [shape: f32[2,1,16], index: 4, kind: input, shape index: {}]   ;;  %s1578_s5 = inlined_call_operand.vmem [shape: bf16[2,32,16], index: 5, kind: input, shape index: {}]   ;;  %s1579_s6 = inlined_call_operand.vmem [shape: f32[2,1,16], index: 6, kind: input, shape index: {}]   ;;  %s1580_s7 = inlined_call_operand.vmem [shape: bf16[2,16,32], index: 7, kind: input, shape index: {}]   ;;  %s1581_s8 = inlined_call_operand.vmem [shape: f32[1,32], index: 8, kind: input, shape index: {}]   ;;  %s1582_s9 = inlined_call_operand.vmem [shape: f32[1,32], index: 9, kind: input, shape index: {}]   ;;  %s1583_s10 = inlined_call_operand.vmem [shape: f32[1,32], index: 10, kind: input, shape index: {}]   ;;  %s1584_s11 = inlined_call_operand.vmem [shape: bf16[32,64], index: 11, kind: input, shape index: {}]   ;;  %s1585_s12 = inlined_call_operand.vmem [shape: f32[1,64], index: 12, kind: input, shape index: {}]   ;;  %s1586_s13 = inlined_call_operand.vmem [shape: bf16[64,32], index: 13, kind: input, shape index: {}]   ;;  %s1587_s14 = inlined_call_operand.vmem [shape: f32[1,32], index: 14, kind: input, shape index: {}]   ;;  %s1588_s15 = inlined_call_operand.vmem [shape: f32[1,32], index: 15, kind: input, shape index: {}]   ;;  %s1589_s16 = inlined_call_operand.vmem [shape: f32[1,32], index: 16, kind: input, shape index: {}]   ;;  %s1590_s17 = inlined_call_operand.vmem [shape: f32[2,8,32], index: 17, kind: output, shape index: {}]  }
   0x1   :  { %1592 = sst [smem:[#allocation2_spill]] %s1573_s0 }
   0x2   :  { %1593 = sst [smem:[#allocation3_spill]] %s1574_s1 }
   0x3 LB: > { %s1149_s25 = sadd.s32 4294967295, %s1314_s24   ;;  %p1153_p0 = scmp.ge.s32.totalorder %s1314_s24, 1  ;;  %s1314_s24 = sphi %s1407_s24, %s27_s24  }
   0x4   : > { %p486_p1 = scmp.lt.s32.totalorder %s1314_s24, 3 }
   0x6   : > { %p487_p2 = pnand %p1153_p0, %p486_p1 }
   0x7   : > { %p536_p3 = scmp.lt.s32.totalorder (!%p487_p2), %s1149_s25, 1  ;;  %s1594_s1 = sld [smem:[#allocation3_spill]] (!%p487_p2) }
   0x8   : > { %490 = sbr.rel (%p487_p2) target bundleno = 1633 (0x661), region = 88  ;;  %s1595_s19 = sld [smem:[#allocation2_spill]] (!%p487_p2) }
   0xd   : > { %v1257_v0 = vld [vmem:[%s1576_s3 + $0x8] sm:$0xff]  ;;  %v1259_v1 = vld [vmem:[%s1576_s3 + $0x18] sm:$0xff]  ;;  %v1256_v2 = vld [vmem:[%s1576_s3] sm:$0xff]  ;;  %s1599_s25 = smov (!%p536_p3, %s1149_s25), 1  ;;  %vm575_vm0 = vcmask 261120   ;;  %vm761_vm1 = vcmask 130048   ;;  %v755_v36 = vlaneseq }
   0xe   : > { %v1253_v3 = vld [vmem:[%s1594_s1 + $0x8] sm:$0xff]  ;;  %653 = vmatpush.bf16.msra.mxu2 %v1257_v0  ;;  %678 = vmatpush.bf16.msra.mxu3 %v1259_v1  ;;  %v1258_v4 = vld [vmem:[%s1576_s3 + $0x10] sm:$0xff]  ;;  %v1255_v5 = vld [vmem:[%s1594_s1 + $0x18] sm:$0xff]  ;;  %s1154_s28 = sshll.u32 %s1599_s25, 3  ;;  %vm806_vm3 = vcmask 64512   ;;  %vm836_vm4 = vcmask 1043456  }
   0xf   : > { %585 = vmatpush.bf16.msra.mxu0 %v1253_v3  ;;  %v1252_v6 = vld [vmem:[%s1594_s1] sm:$0xff]  ;;  %610 = vmatpush.bf16.msra.mxu1 %v1255_v5  ;;  %v1254_v7 = vld [vmem:[%s1594_s1 + $0x10] sm:$0xff]  ;;  %s539_s20 = scalar_lea.vmem %s1595_s19, %s1154_s28  ;;  %v1261_v32 = vld [vmem:[%s1578_s5 + $0x8] sm:$0xff]  ;;  %v756_v37 = vshrl.u32 %v755_v36, 7  ;;  %v758_v38 = vand.u32 127, %v755_v36  ;;  %vm1045_vm9 = vcmask 523264   ;;  %s543_s18 = scalar_lea.vmem %s1590_s17, %s1154_s28 }
  0x10   : > { %v1447_v8 = vld [vmem:[%s539_s20] sm:$0xff]  ;;  %v1263_v33 = vld [vmem:[%s1578_s5 + $0x18] sm:$0xff]  ;;  %v1262_v35 = vld [vmem:[%s1578_s5 + $0x10] sm:$0xff] }
  0x11   : > { %v546_v9 = vpack.c.bf16 %v1447_v8, %v1447_v8  ;;  %v1281_v12 = vld [vmem:[%s1577_s4] ss:$0 sm:$0xff]  ;;  %v1282_v13 = vld [vmem:[%s1577_s4 + $0x1] ss:$0 sm:$0xff]  ;;  %v759_v39 = vsub.s32 %v758_v38, %v756_v37 }
  0x12   : > { %654 = vmatpush.bf16.msra.mxu2 %v1256_v2  ;;  %679 = vmatpush.bf16.msra.mxu3 %v1258_v4  ;;  %v1283_v18 = vld [vmem:[%s1575_s2] ss:$0 sm:$0xff]  ;;  %v1284_v19 = vld [vmem:[%s1575_s2 + $0x1] ss:$0 sm:$0xff] }
  0x13   : > { %586 = vmatpush.bf16.msra.mxu0 %v1252_v6  ;;  %611 = vmatpush.bf16.msra.mxu1 %v1254_v7  ;;  %v1260_v34 = vld [vmem:[%s1578_s5] sm:$0xff]  ;;  %vm1485_vm2 = vcmp.lt.s32.totalorder %v759_v39, 1  ;;  %v1316_v39 = vmov 32.0  }
  0x14   : > { %v1285_v51 = vld [vmem:[%s1579_s6] ss:$0 sm:$0xff]  ;;  %v1286_v52 = vld [vmem:[%s1579_s6 + $0x1] ss:$0 sm:$0xff] }
  0x15   : > { %1182 = vmatmul.msk.bf16.vlgmr.msra.gmra.mxu2 %vm575_vm0, %v546_v9  ;;  %1191 = vmatmul.msk.bf16.vlgmr.msra.gmra.mxu3 %vm575_vm0, %v546_v9 }
  0x16   : > { %1164 = vmatmul.msk.bf16.vlgmr.msra.gmra.mxu0 %vm575_vm0, %v546_v9  ;;  %1173 = vmatmul.msk.bf16.vlgmr.msra.gmra.mxu1 %vm575_vm0, %v546_v9 }
  0x17   : > { %721 = vmatpush.bf16.msrb.mxu0 %v1261_v32  ;;  %746 = vmatpush.bf16.msrb.mxu1 %v1263_v33 }
  0x1b   : > { %722 = vmatpush.bf16.msrb.mxu0 %v1260_v34  ;;  %747 = vmatpush.bf16.msrb.mxu1 %v1262_v35 }
  0x26   : > { %1200 = vmatmul.msk.bf16.vlgmr.msrb.gmra.mxu0 %vm575_vm0, %v546_v9  ;;  %1209 = vmatmul.msk.bf16.vlgmr.msrb.gmra.mxu1 %vm575_vm0, %v546_v9 }
  0x93   : > { %v588_v10 = vpop.f32.mrf.mxu0  ;;  %v613_v11 = vpop.f32.mrf.mxu1 }
  0x94   : > { %v589_v25 = vadd.f32 %v1283_v18, %v588_v10  ;;  %v614_v27 = vadd.f32 %v1284_v19, %v613_v11 }
  0x96   : > { %v617_v30 = vpack.c.bf16 %v589_v25, %v589_v25  ;;  %v618_v31 = vpack.c.bf16 %v614_v27, %v614_v27 }
  0x98   : > { %v656_v14 = vpop.f32.mrf.mxu2  ;;  %v681_v15 = vpop.f32.mrf.mxu3 }
  0x99   : > { %v657_v16 = vadd.f32 %v1281_v12, %v656_v14  ;;  %v682_v17 = vadd.f32 %v1282_v13, %v681_v15 }
  0x9b   : > { %v685_v20 = vpack.c.bf16 %v657_v16, %v657_v16  ;;  %v686_v21 = vpack.c.bf16 %v682_v17, %v682_v17  ;;  %v590_v22 = vpop.f32.mrf.mxu0  ;;  %v615_v23 = vpop.f32.mrf.mxu1 }
  0x9d   : > { %v766_v24 = vsel %vm761_vm1, %v685_v20, 0  ;;  %v785_v26 = vsel %vm761_vm1, %v686_v21, 0  ;;  %v1264_v20 = vld [vmem:[%s1580_s7] sm:$0xff]  ;;  %v1265_v21 = vld [vmem:[%s1580_s7 + $0x8] sm:$0xff] }
  0x9e   : > { %775 = vmatpush.bf16.xpose.msrb.mxu2 %v766_v24  ;;  %794 = vmatpush.bf16.xpose.msrb.mxu3 %v785_v26 }
  0xa0   : > { %v658_v28 = vpop.f32.mrf.mxu2  ;;  %v683_v29 = vpop.f32.mrf.mxu3 }
  0xa3   : > { %v724_v53 = vpop.f32.mrf.mxu0  ;;  %v749_v54 = vpop.f32.mrf.mxu1 }
  0xa4   : > { %v725_v55 = vadd.f32 %v1285_v51, %v724_v53  ;;  %v750_v56 = vadd.f32 %v1286_v52, %v749_v54  ;;  %v1266_v51 = vld [vmem:[%s1584_s11] sm:$0xff]  ;;  %v1271_v52 = vld [vmem:[%s1586_s13 + $0x18] sm:$0xff] }
  0xa5   : > { %1210 = vmatmul.msk.bf16.vlgmr.msrb.gmra.mxu2 %vm761_vm1, %v617_v30  ;;  %1211 = vmatmul.msk.bf16.vlgmr.msrb.gmra.mxu3 %vm761_vm1, %v618_v31  ;;  %v1287_v31 = vld [vmem:[%s1581_s8] ss:$0 sm:$0xff] }
  0xa6   : > { %v753_v57 = vpack.c.bf16 %v725_v55, %v725_v55  ;;  %v754_v58 = vpack.c.bf16 %v750_v56, %v750_v56  ;;  %894 = vmatpush.bf16.msra.mxu2 %v1264_v20  ;;  %916 = vmatpush.bf16.msra.mxu3 %v1265_v21  ;;  %v1270_v55 = vld [vmem:[%s1586_s13 + $0x10] sm:$0xff] }
  0xa8   : > { %v838_v60 = vsel %vm836_vm4, %v753_v57, 0  ;;  %v857_v61 = vsel %vm836_vm4, %v754_v58, 0 }
  0xa9   : > { %847 = vmatpush.bf16.msra.mxu0 %v838_v60  ;;  %866 = vmatpush.bf16.msra.mxu1 %v857_v61 }
  0xab   : > { %v726_v0 = vpop.f32.mrf.mxu0  ;;  %v751_v1 = vpop.f32.mrf.mxu1 }
  0xac   : > { %v1289_v1 = vld [vmem:[%s1583_s10] ss:$0 sm:$0xff] }
  0xad   : > { %1053 = vmatpush.bf16.msrb.mxu1 %v1271_v52 }
  0xb1   : > { %1054 = vmatpush.bf16.msrb.mxu1 %v1270_v55 }
 0x128   : > { %v777_v40 = vpop.f32.mrf.mxu2  ;;  %v796_v42 = vpop.f32.mrf.mxu3 }
 0x129   : > { %v800_v43 = vmul.f32 0.25, %v777_v40  ;;  %v801_v45 = vmul.f32 0.25, %v796_v42 }
 0x12b   : > { %v804_v44 = vsel %vm1485_vm2, %v800_v43, -1e+32  ;;  %v805_v47 = vsel %vm1485_vm2, %v801_v45, -1e+32 }
 0x12c   : > { %v807_v46 = vsel %vm806_vm3, %v804_v44, -inf  ;;  %v810_v50 = vsel %vm806_vm3, %v805_v47, -inf }
 0x12d   : > { %808 = vmax.xlane.f32.xlu0 %v807_v46 }
 0x130   : > { %v779_v48 = vpop.f32.mrf.mxu2  ;;  %v798_v49 = vpop.f32.mrf.mxu3 }
 0x135   : > { %811 = vmax.xlane.f32.xlu0 %v810_v50 }
 0x1a0   : > { %v809_v59 = vpop.xlane.xlu0 %808 }
 0x1a1   : > { %v813_v62 = vsub.f32 %v804_v44, %v809_v59 }
 0x1a3   : > { %v815_v63 = vmul.f32 1.442695, %v813_v62 }
 0x1a5   : > { %1294 = vpow2.f32 %v815_v63  ;;  %v1288_v63 = vld [vmem:[%s1582_s9] ss:$0 sm:$0xff] }
 0x1a8   : > { %v812_v2 = vpop.xlane.xlu0 %811 }
 0x1a9   : > { %v814_v3 = vsub.f32 %v805_v47, %v812_v2 }
 0x1ab   : > { %v1295_v4 = vpop.eup %1294  ;;  %v817_v5 = vmul.f32 1.442695, %v814_v3 }
 0x1ac   : > { %v819_v6 = vsel %vm806_vm3, %v1295_v4, 0.0 }
 0x1ad   : > { %1296 = vpow2.f32 %v817_v5  ;;  %820 = vadd.xlane.f32.xlu1 %v819_v6  ;;  %v1269_v6 = vld [vmem:[%s1586_s13 + $0x8] sm:$0xff] }
 0x1ae   : > { %1055 = vmatpush.bf16.msrb.mxu1 %v1269_v6 }
 0x1b3   : > { %v1297_v7 = vpop.eup %1296 }
 0x1b4   : > { %v822_v9 = vsel %vm806_vm3, %v1297_v7, 0.0 }
 0x1b5   : > { %823 = vadd.xlane.f32.xlu1 %v822_v9  ;;  %v1290_v9 = vld [vmem:[%s1585_s12] ss:$0 sm:$0xff] }
 0x220   : > { %v821_v10 = vpop.xlane.xlu1 %820 }
 0x221   : > { %1298 = vrcp.f32 %v821_v10 }
 0x227   : > { %v1299_v11 = vpop.eup %1298 }
 0x228   : > { %v827_v12 = vmul.f32 %v1299_v11, %v1295_v4  ;;  %v824_v13 = vpop.xlane.xlu1 %823 }
 0x229   : > { %1300 = vrcp.f32 %v824_v13 }
 0x22a   : > { %v829_v14 = vsel %vm1485_vm2, %v827_v12, 0.0  ;;  %1302 = vrcp.f32 %v1316_v39 }
 0x22b   : > { %v831_v15 = vpack.c.bf16 %v829_v14, %v829_v14 }
 0x22d   : > { %1212 = vmatmul.msk.bf16.vlgmr.msra.gmra.mxu0 %vm806_vm3, %v831_v15  ;;  %v1291_v15 = vld [vmem:[%s1587_s14] ss:$0 sm:$0xff] }
 0x22f   : > { %v1301_v16 = vpop.eup %1300 }
 0x230   : > { %v828_v17 = vmul.f32 %v1301_v16, %v1297_v7  ;;  %v1303_v40 = vpop.eup %1302  ;;  %v1268_v7 = vld [vmem:[%s1586_s13] sm:$0xff] }
 0x231   : > { %v935_v41 = vmul.f32 32.0, %v1303_v40  ;;  %vm939_vm5 = vweird.f32 %v1303_v40  ;;  %1056 = vmatpush.bf16.msrb.mxu1 %v1268_v7 }
 0x232   : > { %v830_v18 = vsel %vm1485_vm2, %v828_v17, 0.0 }
 0x233   : > { %v832_v19 = vpack.c.bf16 %v830_v18, %v830_v18  ;;  %v936_v42 = vsub.f32 1.0, %v935_v41 }
 0x235   : > { %1213 = vmatmul.msk.bf16.vlgmr.msra.gmra.mxu1 %vm806_vm3, %v832_v19  ;;  %v937_v43 = vmul.f32 %v1303_v40, %v936_v42 }
 0x237   : > { %v938_v44 = vadd.f32 %v1303_v40, %v937_v43 }
 0x239   : > { %v940_v45 = vsel %vm939_vm5, %v1303_v40, %v938_v44 }
 0x2aa   : > { %v849_v22 = vpop.f32.mrf.mxu0 }
 0x2ab   : > { %v872_v23 = vpack.c.bf16 %v849_v22, %v849_v22 }
 0x2ad   : > { %1218 = vmatmul.msk.bf16.vlgmr.msra.gmra.mxu2 %vm761_vm1, %v872_v23 }
 0x2b2   : > { %v851_v24 = vpop.f32.mrf.mxu0  ;;  %v868_v25 = vpop.f32.mrf.mxu1 }
 0x2b3   : > { %v873_v26 = vpack.c.bf16 %v868_v25, %v868_v25 }
 0x2b5   : > { %1223 = vmatmul.msk.bf16.vlgmr.msra.gmra.mxu3 %vm761_vm1, %v873_v26 }
 0x2ba   : > { %v870_v27 = vpop.f32.mrf.mxu1 }
 0x330   : > { %v896_v28 = vpop.f32.mrf.mxu2 }
 0x331   : > { %v922_v32 = vsel %vm575_vm0, %v896_v28, 0.0 }
 0x338   : > { %v898_v29 = vpop.f32.mrf.mxu2  ;;  %v918_v30 = vpop.f32.mrf.mxu3 }
 0x339   : > { %v923_v33 = vsel %vm575_vm0, %v918_v30, 0.0 }
 0x33a   : > { %v924_v34 = vadd.f32 %v923_v33, %v922_v32 }
 0x33c   : > { %v929_v35 = vadd.f32 %v1287_v31, %v924_v34 }
 0x33e   : > { %v930_v36 = vadd.f32 %v929_v35, %v1447_v8  ;;  %v1267_v8 = vld [vmem:[%s1584_s11 + $0x8] sm:$0xff]  ;;  %v1292_v35 = vld [vmem:[%s1588_s15] ss:$0 sm:$0xff] }
 0x33f   : > { %1000 = vmatpush.bf16.msrb.mxu0 %v1267_v8 }
 0x340   : > { %v920_v37 = vpop.f32.mrf.mxu3  ;;  %v931_v38 = vsel %vm575_vm0, %v930_v36, 0.0 }
 0x341   : > { %932 = vadd.xlane.f32.xlu2 %v931_v38  ;;  %v1293_v37 = vld [vmem:[%s1589_s16] ss:$0 sm:$0xff] }
 0x343   : > { %1001 = vmatpush.bf16.msrb.mxu0 %v1266_v51 }
 0x3b4   : > { %v933_v46 = vpop.xlane.xlu2 %932 }
 0x3b5   : > { %v941_v47 = vmul.f32 %v940_v45, %v933_v46 }
 0x3b7   : > { %v942_v48 = vsub.f32 %v930_v36, %v941_v47 }
 0x3b9   : > { %v943_v49 = vmul.f32 %v942_v48, %v942_v48 }
 0x3bb   : > { %v944_v50 = vsel %vm575_vm0, %v943_v49, 0.0 }
 0x3bc   : > { %945 = vadd.xlane.f32.xlu2 %v944_v50 }
 0x42f   : > { %v946_v53 = vpop.xlane.xlu2 %945 }
 0x430   : > { %v947_v54 = vmul.f32 %v946_v53, %v940_v45 }
 0x432   : > { %v948_v56 = vadd.f32 1e-05, %v947_v54 }
 0x434   : > { %1304 = vrsqrt.f32 %v948_v56  ;;  %vm955_vm7 = vweird.f32 %v948_v56 }
 0x43a   : > { %v1305_v57 = vpop.eup %1304 }
 0x43b   : > { %v950_v58 = vmul.f32 %v1305_v57, %v948_v56  ;;  %vm956_vm6 = vweird.f32 %v1305_v57 }
 0x43c   : > { %vm957_vm8 = vmor %vm955_vm7, %vm956_vm6 }
 0x43d   : > { %v951_v59 = vmul.f32 %v1305_v57, %v950_v58 }
 0x43f   : > { %v952_v60 = vmul.f32 0.5, %v951_v59 }
 0x441   : > { %v953_v61 = vsub.f32 1.5, %v952_v60 }
 0x443   : > { %v954_v62 = vmul.f32 %v1305_v57, %v953_v61 }
 0x445   : > { %v958_v0 = vsel %vm957_vm8, %v1305_v57, %v954_v62 }
 0x446   : > { %v959_v2 = vmul.f32 %v958_v0, %v942_v48 }
 0x448   : > { %v964_v3 = vmul.f32 %v1288_v63, %v959_v2 }
 0x44a   : > { %v969_v4 = vadd.f32 %v1289_v1, %v964_v3 }
 0x44c   : > { %v970_v5 = vpack.c.bf16 %v969_v4, %v969_v4 }
 0x44e   : > { %1232 = vmatmul.msk.bf16.vlgmr.msrb.gmra.mxu0 %vm575_vm0, %v970_v5 }
 0x4cb   : > { %v1003_v10 = vpop.f32.mrf.mxu0 }
 0x4cc   : > { %v1004_v11 = vadd.f32 %v1290_v9, %v1003_v10 }
 0x4ce   : > { %v1007_v12 = vmax.f32 %v1004_v11, 0.0 }
 0x4d0   : > { %v1008_v13 = vpack.c.bf16 %v1007_v12, %v1007_v12 }
 0x4d2   : > { %1249 = vmatmul.msk.bf16.vlgmr.msrb.gmra.mxu1 %vm1045_vm9, %v1008_v13 }
 0x4d3   : > { %v1005_v14 = vpop.f32.mrf.mxu0 }
 0x54f   : > { %v1058_v16 = vpop.f32.mrf.mxu1 }
 0x550   : > { %v1059_v17 = vadd.f32 %v1291_v15, %v1058_v16 }
 0x552   : > { %v1062_v18 = vadd.f32 %v1059_v17, %v969_v4 }
 0x554   : > { %v1063_v19 = vsel %vm575_vm0, %v1062_v18, 0.0 }
 0x555   : > { %1064 = vadd.xlane.f32.xlu0 %v1063_v19 }
 0x557   : > { %v1060_v20 = vpop.f32.mrf.mxu1 }
 0x5c8   : > { %v1065_v21 = vpop.xlane.xlu0 %1064 }
 0x5c9   : > { %v1066_v22 = vmul.f32 %v1065_v21, %v940_v45 }
 0x5cb   : > { %v1067_v23 = vsub.f32 %v1062_v18, %v1066_v22 }
 0x5cd   : > { %v1068_v24 = vmul.f32 %v1067_v23, %v1067_v23 }
 0x5cf   : > { %v1069_v25 = vsel %vm575_vm0, %v1068_v24, 0.0 }
 0x5d0   : > { %1070 = vadd.xlane.f32.xlu1 %v1069_v25 }
 0x643   : > { %v1071_v26 = vpop.xlane.xlu1 %1070 }
 0x644   : > { %v1072_v27 = vmul.f32 %v1071_v26, %v940_v45 }
 0x646   : > { %v1073_v28 = vadd.f32 1e-05, %v1072_v27 }
 0x648   : > { %1306 = vrsqrt.f32 %v1073_v28  ;;  %vm1080_vm11 = vweird.f32 %v1073_v28 }
 0x64e   : > { %v1307_v29 = vpop.eup %1306 }
 0x64f   : > { %v1075_v30 = vmul.f32 %v1307_v29, %v1073_v28  ;;  %vm1081_vm10 = vweird.f32 %v1307_v29 }
 0x650   : > { %vm1082_vm12 = vmor %vm1080_vm11, %vm1081_vm10 }
 0x651   : > { %v1076_v31 = vmul.f32 %v1307_v29, %v1075_v30 }
 0x653   : > { %v1077_v32 = vmul.f32 0.5, %v1076_v31 }
 0x655   : > { %v1078_v33 = vsub.f32 1.5, %v1077_v32 }
 0x657   : > { %v1079_v34 = vmul.f32 %v1307_v29, %v1078_v33 }
 0x659   : > { %v1083_v36 = vsel %vm1082_vm12, %v1307_v29, %v1079_v34 }
 0x65a   : > { %v1084_v38 = vmul.f32 %v1083_v36, %v1067_v23 }
 0x65c   : > { %v1089_v39 = vmul.f32 %v1292_v35, %v1084_v38 }
 0x65e   : > { %v1094_v40 = vadd.f32 %v1293_v37, %v1089_v39 }
 0x660   : > { %1095 = vst.msk [vmem:[%s543_s18] sm:$0xff] %vm575_vm0, %v1094_v40 }
 0x661 PF: > { %s27_s24 = sadd.s32 1, %s1314_s24  }
 0x662   : > { %p24_p4 = scmp.ge.s32.totalorder %s27_s24, 4  }
 0x664   :  { %26 = sbr.rel (!%p24_p4) target bundleno = 3 (0x3), region = 118 }

// kernel: architecture_forward.5
= control target key start
LH: loop header
LB: loop body
LE: loop exit
PB: predicated region body
PF: predicated region fallthrough
CT: control target
= control target key end

     0   :  { %s1821_s0 = inlined_call_operand.vmem [shape: f32[2,8,32], index: 0, kind: input, shape index: {}]   ;;  %s1822_s1 = inlined_call_operand.vmem [shape: f32[2,8,32], index: 1, kind: input, shape index: {}]   ;;  %s1823_s2 = inlined_call_operand.vmem [shape: bf16[2,32,16], index: 2, kind: input, shape index: {}]   ;;  %s1824_s3 = inlined_call_operand.vmem [shape: f32[2,1,16], index: 3, kind: input, shape index: {}]   ;;  %s1825_s4 = inlined_call_operand.vmem [shape: bf16[2,32,16], index: 4, kind: input, shape index: {}]   ;;  %s1826_s5 = inlined_call_operand.vmem [shape: f32[2,1,16], index: 5, kind: input, shape index: {}]   ;;  %s1827_s6 = inlined_call_operand.vmem [shape: bf16[2,32,16], index: 6, kind: input, shape index: {}]   ;;  %s1828_s7 = inlined_call_operand.vmem [shape: f32[2,1,16], index: 7, kind: input, shape index: {}]   ;;  %s1829_s8 = inlined_call_operand.vmem [shape: bf16[2,16,32], index: 8, kind: input, shape index: {}]   ;;  %s1830_s9 = inlined_call_operand.vmem [shape: f32[1,32], index: 9, kind: input, shape index: {}]   ;;  %s1831_s10 = inlined_call_operand.vmem [shape: f32[1,32], index: 10, kind: input, shape index: {}]   ;;  %s1832_s11 = inlined_call_operand.vmem [shape: f32[1,32], index: 11, kind: input, shape index: {}]   ;;  %s1833_s12 = inlined_call_operand.vmem [shape: bf16[32,64], index: 12, kind: input, shape index: {}]   ;;  %s1834_s13 = inlined_call_operand.vmem [shape: f32[1,64], index: 13, kind: input, shape index: {}]   ;;  %s1835_s14 = inlined_call_operand.vmem [shape: bf16[64,32], index: 14, kind: input, shape index: {}]   ;;  %s1836_s15 = inlined_call_operand.vmem [shape: f32[1,32], index: 15, kind: input, shape index: {}]   ;;  %s1837_s16 = inlined_call_operand.vmem [shape: f32[1,32], index: 16, kind: input, shape index: {}]   ;;  %s1838_s17 = inlined_call_operand.vmem [shape: f32[1,32], index: 17, kind: input, shape index: {}]   ;;  %s1839_s18 = inlined_call_operand.hbm [shape: f32[2,8,32], index: 18, kind: output, shape index: {}]  }
   0x1   :  { %1848 = sst [smem:[#allocation11_spill]] %s1821_s0 }
   0x2   :  { %1849 = sst [smem:[#allocation12_spill]] %s1822_s1 }
   0x3   :  { %1850 = sst [smem:[#allocation13_spill]] %s1823_s2 }
   0x4   :  { %1851 = sst [smem:[#allocation14_spill]] %s1825_s4 }
   0x5   :  { %23 = vsyncpa [#allocation3], 0 }
   0x6   :  { %25 = vsyncpa [#allocation3 + $0x1], 0  ;;  %s1584_s27 = smov 0   ;;  %s1586_s28 = smov 0  }
   0x7   :  { %s1588_s29 = smov 0   ;;  %s1590_s30 = smov 0  }
   0x8 LB: > { %1852 = sst [smem:[#allocation5_spill]] %s1474_s27  ;;  %s1605_s0 = sadd.s32 4294967295, %s1486_s30   ;;  %s1486_s30 = sphi %s1590_s30, %s1869_s30   ;;  %s1482_s29 = sphi %s1588_s29, %s1871_s29   ;;  %s1478_s28 = sphi %s1586_s28, %s1873_s28   ;;  %s1474_s27 = sphi %s1584_s27, %s1872_s27  }
   0x9   : > { %1853 = sst [smem:[#allocation6_spill]] %s1482_s29  ;;  %s1232_s19 = sadd.s32 4294967294, %s1486_s30  }
   0xa   : > { %1854 = sst [smem:[#allocation7_spill]] %s1486_s30  ;;  %s1609_s1 = sadd.s32 1, %s1486_s30  }
   0xb   : > { %1855 = sst [smem:[#allocation8_spill]] %s1609_s1  ;;  %s426_s20 = sadd.s32 1, %s1482_s29 }
   0xc   : > { %s423_s21 = ssub.s32 %s1486_s30, %s1609_s1  ;;  %p436_p0 = scmp.ne.s32.totalorder %s1482_s29, %s1478_s28 }
   0xd   : > { %p424_p1 = scmp.eq.s32.totalorder %s423_s21, 0  ;;  %p437_p2 = scmp.eq.s32.totalorder %s1605_s0, 1 }
   0xe   : > { %p442_p3 = scmp.ne.s32.totalorder %s1478_s28, %s1474_s27  ;;  %p443_p4 = scmp.eq.s32.totalorder %s1232_s19, 1 }
   0xf   : > { %s1620_s22 = scalar_select %p424_p1, %s1482_s29, %s426_s20  }
  0x10   : > { %p1622_p5 = por %p437_p2, %p436_p0  ;;  %p1626_p6 = por %p443_p4, %p442_p3 }
  0x11   : > { %1856 = sst [smem:[#allocation9_spill]] %s1620_s22  ;;  %p1235_p7 = scmp.ge.s32.totalorder %s1486_s30, 1 }
  0x12   : > { %s1858_s23 = scalar_select %p1626_p6, 1, 0 }
  0x13   : > { %p523_p8 = scmp.lt.s32.totalorder %s1486_s30, 3 }
  0x14   : > { %1859 = sst [smem:[#allocation10_spill]] %s1858_s23 }
  0x15   : > { %p524_p9 = pnand %p1235_p7, %p523_p8 }
  0x16   : > { %s1860_s4 = sld [smem:[#allocation14_spill]] (!%p524_p9)  ;;  %p580_p10 = scmp.lt.s32.totalorder (!%p524_p9), %s1605_s0, 1 }
  0x17   : > { %527 = sbr.rel (%p524_p9) target bundleno = 1653 (0x675), region = 92  ;;  %s1861_s1 = sld [smem:[#allocation13_spill]] (!%p524_p9) }
  0x18   : > { %s1865_s23 = sld [smem:[#allocation12_spill]] (!%p524_p9)  ;;  %s577_s19 = sand.u32 (!%p524_p9), 1, %s1478_s28  }
  0x19   : > { %s1236_s20 = sshll.u32 (!%p524_p9), %s577_s19, 3  ;;  %s1334_s22 = sshll.u32 (!%p524_p9), %s1605_s0, 3 }
  0x1a   : > { %s1146_s21 = scalar_lea.sflag (!%p524_p9), [#allocation3], %s577_s19 }
  0x1c   : > { %v1342_v0 = vld [vmem:[%s1860_s4 + $0x8] sm:$0xff]  ;;  %v1344_v1 = vld [vmem:[%s1860_s4 + $0x18] sm:$0xff]  ;;  %v1341_v2 = vld [vmem:[%s1860_s4] sm:$0xff]  ;;  %s1649_s25 = scalar_select %p580_p10, %s1605_s0, 1  ;;  %vm621_vm0 = vcmask 261120   ;;  %vm810_vm1 = vcmask 130048   ;;  %v804_v36 = vlaneseq }
  0x1d   : > { %v1338_v3 = vld [vmem:[%s1861_s1 + $0x8] sm:$0xff]  ;;  %699 = vmatpush.bf16.msra.mxu2 %v1342_v0  ;;  %724 = vmatpush.bf16.msra.mxu3 %v1344_v1  ;;  %v1343_v4 = vld [vmem:[%s1860_s4 + $0x10] sm:$0xff]  ;;  %v1340_v5 = vld [vmem:[%s1861_s1 + $0x18] sm:$0xff]  ;;  %s1862_s4 = sld [smem:[#allocation11_spill]]  ;;  %vm855_vm3 = vcmask 64512   ;;  %vm885_vm4 = vcmask 1043456  }
  0x1e   : > { %631 = vmatpush.bf16.msra.mxu0 %v1338_v3  ;;  %v1337_v6 = vld [vmem:[%s1861_s1] sm:$0xff]  ;;  %s1237_s29 = sshll.u32 %s1649_s25, 3  ;;  %656 = vmatpush.bf16.msra.mxu1 %v1340_v5  ;;  %v1339_v7 = vld [vmem:[%s1861_s1 + $0x10] sm:$0xff]  ;;  %v1346_v32 = vld [vmem:[%s1827_s6 + $0x8] sm:$0xff]  ;;  %v805_v37 = vshrl.u32 %v804_v36, 7  ;;  %v807_v38 = vand.u32 127, %v804_v36 }
  0x1f   : > { %v1397_v12 = vld [vmem:[%s1826_s5] ss:$0 sm:$0xff]  ;;  %v1398_v13 = vld [vmem:[%s1826_s5 + $0x1] ss:$0 sm:$0xff]  ;;  %v1348_v33 = vld [vmem:[%s1827_s6 + $0x18] sm:$0xff]  ;;  %s587_s24 = scalar_lea.vmem %s1865_s23, %s1237_s29  ;;  %v1488_v41 = vmov 32.0  }
  0x20   : > { %v1399_v18 = vld [vmem:[%s1824_s3] ss:$0 sm:$0xff]  ;;  %v1400_v19 = vld [vmem:[%s1824_s3 + $0x1] ss:$0 sm:$0xff]  ;;  %v1347_v35 = vld [vmem:[%s1827_s6 + $0x10] sm:$0xff]  ;;  %v808_v39 = vsub.s32 %v807_v38, %v805_v37  ;;  %vm1094_vm9 = vcmask 523264  }
  0x21   : > { %700 = vmatpush.bf16.msra.mxu2 %v1341_v2  ;;  %725 = vmatpush.bf16.msra.mxu3 %v1343_v4  ;;  %v1345_v34 = vld [vmem:[%s1827_s6] sm:$0xff] }
  0x22   : > { %632 = vmatpush.bf16.msra.mxu0 %v1337_v6  ;;  %657 = vmatpush.bf16.msra.mxu1 %v1339_v7  ;;  %vm1702_vm2 = vcmp.lt.s32.totalorder %v808_v39, 0  ;;  %v591_v51 = vld [vmem:[%s587_s24] sm:$0xff] }
  0x23   : > { %s583_s30 = scalar_lea.vmem %s1862_s4, %s1237_s29  ;;  %v592_v52 = vpack.c.bf16 %v591_v51, %v591_v51  ;;  %v1401_v63 = vld [vmem:[%s1828_s7] ss:$0 sm:$0xff]  ;;  %v1402_v0 = vld [vmem:[%s1828_s7 + $0x1] ss:$0 sm:$0xff]  ;;  %s1156_s29 = scalar_lea.hbm %s1839_s18, %s1334_s22 }
  0x24   : > { %v1666_v8 = vld [vmem:[%s583_s30] sm:$0xff]  ;;  %s579_s30 = scalar_lea.vmem [#allocation2], %s1236_s20  ;;  %s1160_s26 = sshll.u32 %s1156_s29, 4  ;;  %s1161_s26 = int_to_ptr.hbm [resolvable:$true] %s1160_s26 }
  0x25   : > { %v590_v9 = vpack.c.bf16 %v1666_v8, %v1666_v8  ;;  %s1158_s0 = sshll.u32 %s579_s30, 4  ;;  %s1438_s23 = sshra.s32 %s1161_s26, 4  ;;  %s1159_s0 = int_to_ptr.vmem [resolvable:$true] %s1158_s0  ;;  %s1439_s23 = int_to_ptr.hbm [resolvable:$true] %s1438_s23 }
  0x26   : > { %770 = vmatpush.bf16.msrb.mxu0 %v1346_v32  ;;  %795 = vmatpush.bf16.msrb.mxu1 %v1348_v33  ;;  %v1403_v33 = vld [vmem:[%s1830_s9] ss:$0 sm:$0xff]  ;;  %s1440_s22 = scalar_lea.hbm %s1439_s23, 8  ;;  %s1444_s20 = scalar_lea.hbm %s1839_s18, 16 }
  0x27   : > { %1265 = vmatmul.msk.bf16.vlgmr.msra.gmra.mxu2 %vm621_vm0, %v590_v9  ;;  %1274 = vmatmul.msk.bf16.vlgmr.msra.gmra.mxu3 %vm621_vm0, %v590_v9  ;;  %p1441_p11 = scmp.ne.s32.totalorder %s1439_s23, %s1440_s22  ;;  %p1445_p0 = scmp.lt.s32.totalorder %s1439_s23, %s1839_s18 }
  0x28   : > { %1247 = vmatmul.msk.bf16.vlgmr.msra.gmra.mxu0 %vm621_vm0, %v590_v9  ;;  %1256 = vmatmul.msk.bf16.vlgmr.msra.gmra.mxu1 %vm621_vm0, %v590_v9  ;;  %p1446_p1 = scmp.lt.s32.totalorder %s1444_s20, %s1440_s22 }
  0x29   : > { %p1442_p12 = pnand %p1441_p11, %p1622_p5 }
  0x2a   : > { %771 = vmatpush.bf16.msrb.mxu0 %v1345_v34  ;;  %796 = vmatpush.bf16.msrb.mxu1 %v1347_v35  ;;  %p1447_p2 = por %p1446_p1, %p1445_p0 }
  0x2b   : > { %p1443_p13 = pneg %p1442_p12 }
  0x2d   : > { %p1448_p3 = pnand %p1447_p2, %p1443_p13 }
  0x38   : > { %1283 = vmatmul.msk.bf16.vlgmr.msrb.gmra.mxu0 %vm621_vm0, %v592_v52  ;;  %1292 = vmatmul.msk.bf16.vlgmr.msrb.gmra.mxu1 %vm621_vm0, %v592_v52 }
  0xa5   : > { %v634_v10 = vpop.f32.mrf.mxu0  ;;  %v659_v11 = vpop.f32.mrf.mxu1 }
  0xa6   : > { %v635_v25 = vadd.f32 %v1399_v18, %v634_v10  ;;  %v660_v27 = vadd.f32 %v1400_v19, %v659_v11 }
  0xa8   : > { %v663_v30 = vpack.c.bf16 %v635_v25, %v635_v25  ;;  %v664_v31 = vpack.c.bf16 %v660_v27, %v660_v27 }
  0xaa   : > { %v702_v14 = vpop.f32.mrf.mxu2  ;;  %v727_v15 = vpop.f32.mrf.mxu3 }
  0xab   : > { %v703_v16 = vadd.f32 %v1397_v12, %v702_v14  ;;  %v728_v17 = vadd.f32 %v1398_v13, %v727_v15 }
  0xad   : > { %v731_v20 = vpack.c.bf16 %v703_v16, %v703_v16  ;;  %v732_v21 = vpack.c.bf16 %v728_v17, %v728_v17  ;;  %v636_v22 = vpop.f32.mrf.mxu0  ;;  %v661_v23 = vpop.f32.mrf.mxu1 }
  0xae   : > { %v1349_v22 = vld [vmem:[%s1829_s8] sm:$0xff]  ;;  %v1350_v23 = vld [vmem:[%s1829_s8 + $0x8] sm:$0xff] }
  0xaf   : > { %v815_v24 = vsel %vm810_vm1, %v731_v20, 0  ;;  %v834_v26 = vsel %vm810_vm1, %v732_v21, 0 }
  0xb0   : > { %824 = vmatpush.bf16.xpose.msrb.mxu2 %v815_v24  ;;  %843 = vmatpush.bf16.xpose.msrb.mxu3 %v834_v26 }
  0xb2   : > { %v704_v28 = vpop.f32.mrf.mxu2  ;;  %v729_v29 = vpop.f32.mrf.mxu3 }
  0xb5   : > { %v773_v1 = vpop.f32.mrf.mxu0  ;;  %v798_v2 = vpop.f32.mrf.mxu1 }
  0xb6   : > { %v774_v3 = vadd.f32 %v1401_v63, %v773_v1  ;;  %v799_v4 = vadd.f32 %v1402_v0, %v798_v2  ;;  %v1404_v1 = vld [vmem:[%s1831_s10] ss:$0 sm:$0xff] }
  0xb7   : > { %1293 = vmatmul.msk.bf16.vlgmr.msrb.gmra.mxu2 %vm810_vm1, %v663_v30  ;;  %1294 = vmatmul.msk.bf16.vlgmr.msrb.gmra.mxu3 %vm810_vm1, %v664_v31 }
  0xb8   : > { %v802_v5 = vpack.c.bf16 %v774_v3, %v774_v3  ;;  %v803_v6 = vpack.c.bf16 %v799_v4, %v799_v4  ;;  %943 = vmatpush.bf16.msra.mxu2 %v1349_v22  ;;  %965 = vmatpush.bf16.msra.mxu3 %v1350_v23  ;;  %v1405_v3 = vld [vmem:[%s1832_s11] ss:$0 sm:$0xff] }
  0xba   : > { %v887_v7 = vsel %vm885_vm4, %v802_v5, 0  ;;  %v906_v9 = vsel %vm885_vm4, %v803_v6, 0 }
  0xbb   : > { %896 = vmatpush.bf16.msra.mxu0 %v887_v7  ;;  %915 = vmatpush.bf16.msra.mxu1 %v906_v9  ;;  %v1354_v9 = vld [vmem:[%s1835_s14 + $0x8] sm:$0xff] }
  0xbd   : > { %v775_v10 = vpop.f32.mrf.mxu0  ;;  %v800_v11 = vpop.f32.mrf.mxu1 }
  0xbe   : > { %v1353_v10 = vld [vmem:[%s1835_s14] sm:$0xff] }
  0xbf   : > { %v1406_v11 = vld [vmem:[%s1834_s13] ss:$0 sm:$0xff] }
 0x13a   : > { %v826_v40 = vpop.f32.mrf.mxu2  ;;  %v845_v42 = vpop.f32.mrf.mxu3 }
 0x13b   : > { %v849_v43 = vmul.f32 0.25, %v826_v40  ;;  %v850_v45 = vmul.f32 0.25, %v845_v42 }
 0x13d   : > { %v853_v44 = vsel %vm1702_vm2, %v849_v43, -1e+32  ;;  %v854_v47 = vsel %vm1702_vm2, %v850_v45, -1e+32 }
 0x13e   : > { %v856_v46 = vsel %vm855_vm3, %v853_v44, -inf  ;;  %v859_v50 = vsel %vm855_vm3, %v854_v47, -inf }
 0x13f   : > { %857 = vmax.xlane.f32.xlu0 %v856_v46 }
 0x142   : > { %v828_v48 = vpop.f32.mrf.mxu2  ;;  %v847_v49 = vpop.f32.mrf.mxu3 }
 0x147   : > { %860 = vmax.xlane.f32.xlu0 %v859_v50 }
 0x1b2   : > { %v858_v53 = vpop.xlane.xlu0 %857 }
 0x1b3   : > { %v862_v54 = vsub.f32 %v853_v44, %v858_v53  ;;  %v1351_v53 = vld [vmem:[%s1833_s12] sm:$0xff] }
 0x1b5   : > { %v864_v55 = vmul.f32 1.442695, %v862_v54  ;;  %v1356_v54 = vld [vmem:[%s1835_s14 + $0x18] sm:$0xff] }
 0x1b6   : > { %1102 = vmatpush.bf16.msrb.mxu1 %v1356_v54 }
 0x1b7   : > { %1410 = vpow2.f32 %v864_v55 }
 0x1ba   : > { %v861_v56 = vpop.xlane.xlu0 %860 }
 0x1bb   : > { %v863_v57 = vsub.f32 %v854_v47, %v861_v56 }
 0x1bd   : > { %v1411_v58 = vpop.eup %1410  ;;  %v866_v59 = vmul.f32 1.442695, %v863_v57  ;;  %v1355_v57 = vld [vmem:[%s1835_s14 + $0x10] sm:$0xff] }
 0x1be   : > { %v868_v60 = vsel %vm855_vm3, %v1411_v58, 0.0  ;;  %1103 = vmatpush.bf16.msrb.mxu1 %v1355_v57 }
 0x1bf   : > { %1412 = vpow2.f32 %v866_v59  ;;  %869 = vadd.xlane.f32.xlu1 %v868_v60 }
 0x1c2   : > { %1104 = vmatpush.bf16.msrb.mxu1 %v1354_v9 }
 0x1c5   : > { %v1413_v61 = vpop.eup %1412 }
 0x1c6   : > { %v871_v62 = vsel %vm855_vm3, %v1413_v61, 0.0  ;;  %1105 = vmatpush.bf16.msrb.mxu1 %v1353_v10 }
 0x1c7   : > { %872 = vadd.xlane.f32.xlu1 %v871_v62 }
 0x232   : > { %v870_v12 = vpop.xlane.xlu1 %869 }
 0x233   : > { %1414 = vrcp.f32 %v870_v12 }
 0x239   : > { %v1415_v13 = vpop.eup %1414 }
 0x23a   : > { %v876_v14 = vmul.f32 %v1415_v13, %v1411_v58  ;;  %v873_v15 = vpop.xlane.xlu1 %872 }
 0x23b   : > { %1416 = vrcp.f32 %v873_v15 }
 0x23c   : > { %v878_v16 = vsel %vm1702_vm2, %v876_v14, 0.0  ;;  %1418 = vrcp.f32 %v1488_v41 }
 0x23d   : > { %v880_v17 = vpack.c.bf16 %v878_v16, %v878_v16 }
 0x23f   : > { %1295 = vmatmul.msk.bf16.vlgmr.msra.gmra.mxu0 %vm855_vm3, %v880_v17  ;;  %v1407_v17 = vld [vmem:[%s1836_s15] ss:$0 sm:$0xff] }
 0x241   : > { %v1417_v18 = vpop.eup %1416 }
 0x242   : > { %v877_v19 = vmul.f32 %v1417_v18, %v1413_v61  ;;  %v1419_v42 = vpop.eup %1418 }
 0x243   : > { %v984_v43 = vmul.f32 32.0, %v1419_v42  ;;  %vm988_vm5 = vweird.f32 %v1419_v42 }
 0x244   : > { %v879_v20 = vsel %vm1702_vm2, %v877_v19, 0.0 }
 0x245   : > { %v881_v21 = vpack.c.bf16 %v879_v20, %v879_v20  ;;  %v985_v44 = vsub.f32 1.0, %v984_v43 }
 0x247   : > { %1296 = vmatmul.msk.bf16.vlgmr.msra.gmra.mxu1 %vm855_vm3, %v881_v21  ;;  %v986_v45 = vmul.f32 %v1419_v42, %v985_v44 }
 0x249   : > { %v987_v46 = vadd.f32 %v1419_v42, %v986_v45 }
 0x24b   : > { %v989_v47 = vsel %vm988_vm5, %v1419_v42, %v987_v46 }
 0x2bc   : > { %v898_v24 = vpop.f32.mrf.mxu0 }
 0x2bd   : > { %v921_v25 = vpack.c.bf16 %v898_v24, %v898_v24 }
 0x2bf   : > { %1301 = vmatmul.msk.bf16.vlgmr.msra.gmra.mxu2 %vm810_vm1, %v921_v25 }
 0x2c4   : > { %v900_v26 = vpop.f32.mrf.mxu0  ;;  %v917_v27 = vpop.f32.mrf.mxu1 }
 0x2c5   : > { %v922_v28 = vpack.c.bf16 %v917_v27, %v917_v27 }
 0x2c7   : > { %1306 = vmatmul.msk.bf16.vlgmr.msra.gmra.mxu3 %vm810_vm1, %v922_v28 }
 0x2cc   : > { %v919_v29 = vpop.f32.mrf.mxu1 }
 0x342   : > { %v945_v30 = vpop.f32.mrf.mxu2 }
 0x343   : > { %v971_v34 = vsel %vm621_vm0, %v945_v30, 0.0 }
 0x34a   : > { %v947_v31 = vpop.f32.mrf.mxu2  ;;  %v967_v32 = vpop.f32.mrf.mxu3 }
 0x34b   : > { %v972_v35 = vsel %vm621_vm0, %v967_v32, 0.0 }
 0x34c   : > { %v973_v36 = vadd.f32 %v972_v35, %v971_v34 }
 0x34e   : > { %v978_v37 = vadd.f32 %v1403_v33, %v973_v36 }
 0x350   : > { %v979_v38 = vadd.f32 %v978_v37, %v1666_v8  ;;  %v1352_v8 = vld [vmem:[%s1833_s12 + $0x8] sm:$0xff]  ;;  %v1408_v37 = vld [vmem:[%s1837_s16] ss:$0 sm:$0xff] }
 0x351   : > { %1049 = vmatpush.bf16.msrb.mxu0 %v1352_v8 }
 0x352   : > { %v969_v39 = vpop.f32.mrf.mxu3  ;;  %v980_v40 = vsel %vm621_vm0, %v979_v38, 0.0 }
 0x353   : > { %981 = vadd.xlane.f32.xlu2 %v980_v40  ;;  %v1409_v40 = vld [vmem:[%s1838_s17] ss:$0 sm:$0xff] }
 0x355   : > { %1050 = vmatpush.bf16.msrb.mxu0 %v1351_v53 }
 0x3c6   : > { %v982_v48 = vpop.xlane.xlu2 %981 }
 0x3c7   : > { %v990_v49 = vmul.f32 %v989_v47, %v982_v48 }
 0x3c9   : > { %v991_v50 = vsub.f32 %v979_v38, %v990_v49 }
 0x3cb   : > { %v992_v51 = vmul.f32 %v991_v50, %v991_v50 }
 0x3cd   : > { %v993_v52 = vsel %vm621_vm0, %v992_v51, 0.0 }
 0x3ce   : > { %994 = vadd.xlane.f32.xlu2 %v993_v52 }
 0x441   : > { %v995_v55 = vpop.xlane.xlu2 %994 }
 0x442   : > { %v996_v56 = vmul.f32 %v995_v55, %v989_v47 }
 0x444   : > { %v997_v58 = vadd.f32 1e-05, %v996_v56 }
 0x446   : > { %1420 = vrsqrt.f32 %v997_v58  ;;  %vm1004_vm7 = vweird.f32 %v997_v58 }
 0x44c   : > { %v1421_v59 = vpop.eup %1420 }
 0x44d   : > { %v999_v60 = vmul.f32 %v1421_v59, %v997_v58  ;;  %vm1005_vm6 = vweird.f32 %v1421_v59 }
 0x44e   : > { %vm1006_vm8 = vmor %vm1004_vm7, %vm1005_vm6 }
 0x44f   : > { %v1000_v61 = vmul.f32 %v1421_v59, %v999_v60 }
 0x451   : > { %v1001_v62 = vmul.f32 0.5, %v1000_v61 }
 0x453   : > { %v1002_v63 = vsub.f32 1.5, %v1001_v62 }
 0x455   : > { %v1003_v0 = vmul.f32 %v1421_v59, %v1002_v63 }
 0x457   : > { %v1007_v2 = vsel %vm1006_vm8, %v1421_v59, %v1003_v0 }
 0x458   : > { %v1008_v4 = vmul.f32 %v1007_v2, %v991_v50 }
 0x45a   : > { %v1013_v5 = vmul.f32 %v1404_v1, %v1008_v4 }
 0x45c   : > { %v1018_v6 = vadd.f32 %v1405_v3, %v1013_v5 }
 0x45e   : > { %v1019_v7 = vpack.c.bf16 %v1018_v6, %v1018_v6 }
 0x460   : > { %1315 = vmatmul.msk.bf16.vlgmr.msrb.gmra.mxu0 %vm621_vm0, %v1019_v7 }
 0x4dd   : > { %v1052_v12 = vpop.f32.mrf.mxu0 }
 0x4de   : > { %v1053_v13 = vadd.f32 %v1406_v11, %v1052_v12 }
 0x4e0   : > { %v1056_v14 = vmax.f32 %v1053_v13, 0.0 }
 0x4e2   : > { %v1057_v15 = vpack.c.bf16 %v1056_v14, %v1056_v14 }
 0x4e4   : > { %1332 = vmatmul.msk.bf16.vlgmr.msrb.gmra.mxu1 %vm1094_vm9, %v1057_v15 }
 0x4e5   : > { %v1054_v16 = vpop.f32.mrf.mxu0 }
 0x561   : > { %v1107_v18 = vpop.f32.mrf.mxu1 }
 0x562   : > { %v1108_v19 = vadd.f32 %v1407_v17, %v1107_v18 }
 0x564   : > { %v1111_v20 = vadd.f32 %v1108_v19, %v1018_v6 }
 0x566   : > { %v1112_v21 = vsel %vm621_vm0, %v1111_v20, 0.0 }
 0x567   : > { %1113 = vadd.xlane.f32.xlu0 %v1112_v21 }
 0x569   : > { %v1109_v22 = vpop.f32.mrf.mxu1 }
 0x5da   : > { %v1114_v23 = vpop.xlane.xlu0 %1113 }
 0x5db   : > { %v1115_v24 = vmul.f32 %v1114_v23, %v989_v47 }
 0x5dd   : > { %v1116_v25 = vsub.f32 %v1111_v20, %v1115_v24 }
 0x5df   : > { %v1117_v26 = vmul.f32 %v1116_v25, %v1116_v25 }
 0x5e1   : > { %v1118_v27 = vsel %vm621_vm0, %v1117_v26, 0.0 }
 0x5e2   : > { %1119 = vadd.xlane.f32.xlu1 %v1118_v27 }
 0x655   : > { %v1120_v28 = vpop.xlane.xlu1 %1119 }
 0x656   : > { %v1121_v29 = vmul.f32 %v1120_v28, %v989_v47 }
 0x658   : > { %v1122_v30 = vadd.f32 1e-05, %v1121_v29 }
 0x65a   : > { %1422 = vrsqrt.f32 %v1122_v30  ;;  %vm1129_vm11 = vweird.f32 %v1122_v30 }
 0x660   : > { %v1423_v31 = vpop.eup %1422 }
 0x661   : > { %v1124_v32 = vmul.f32 %v1423_v31, %v1122_v30  ;;  %vm1130_vm10 = vweird.f32 %v1423_v31 }
 0x662   : > { %vm1131_vm12 = vmor %vm1129_vm11, %vm1130_vm10 }
 0x663   : > { %v1125_v33 = vmul.f32 %v1423_v31, %v1124_v32 }
 0x665   : > { %v1126_v34 = vmul.f32 0.5, %v1125_v33 }
 0x667   : > { %v1127_v35 = vsub.f32 1.5, %v1126_v34 }
 0x669   : > { %v1128_v36 = vmul.f32 %v1423_v31, %v1127_v35 }
 0x66b   : > { %v1132_v38 = vsel %vm1131_vm12, %v1423_v31, %v1128_v36 }
 0x66c   : > { %v1133_v39 = vmul.f32 %v1132_v38, %v1116_v25 }
 0x66e   : > { %v1138_v41 = vmul.f32 %v1408_v37, %v1133_v39 }
 0x670   : > { %v1143_v42 = vadd.f32 %v1409_v40, %v1138_v41 }
 0x672   : > { %1144 = vst.msk [vmem:[%s579_s30] sm:$0xff] %vm621_vm0, %v1143_v42 }
 0x673   : > { %1451 = shalt.err (!%p1448_p3)
}
 0x674   : > { %1357 = dma.vmem_to_hbm [thread:$0]  (%p1622_p5), %s1159_s0, 128, %s1161_s26, %s1146_s21  }
 0x675 PF: > { %s1866_s19 = sld [smem:[#allocation7_spill]] }
 0x676   : > { %s1867_s27 = sld [smem:[#allocation5_spill]] }
 0x67b   : > { %p1363_p4 = scmp.ge.s32.totalorder %s1866_s19, 2 }
 0x67c   : > { %s1172_s1 = sand.u32 1, %s1867_s27  }
 0x67d   : > { %p1360_p7 = pnand %p1363_p4, %p1626_p6  ;;  %s1173_s24 = scalar_lea.sflag [#allocation3], %s1172_s1 }
 0x67f   : > { %p1361_p8 = pneg %p1360_p7 }
 0x681   : > { %1469 = dma.done.wait (%p1361_p8), %s1173_s24, 128  }
 0x682   : > { %1471 = vsyncadd (%p1361_p8), %s1173_s24, 4294967168  ;;  %s1869_s30 = sld [smem:[#allocation8_spill]]  ;;  %s1872_s27 = smov %s1478_s28 }
 0x683   : > { %s1870_s23 = sld [smem:[#allocation6_spill]] }
 0x684   : > { %s1871_s29 = sld [smem:[#allocation9_spill]] }
 0x688   : > { %p28_p9 = scmp.ge.s32.totalorder %s1869_s30, 4  }
 0x689   : > { %s1873_s28 = smov %s1870_s23 }
 0x68a   :  { %30 = sbr.rel (!%p28_p9) target bundleno = 8 (0x8), region = 130 }
 0x68f   :  { %1179 = vsyncpa [#allocation3], 1 }
 0x690   :  { %1181 = vsyncpa [#allocation3 + $0x1], 1 }

</bundles_post_ra>
